<compile_context>
chip_gen: v6e
topology: v6e:2x2x1
jax: 0.10.0
libtpu: 0.0.40
codegen_flags: <defaults>
</compile_context>

<pallas_src>
import functools

import jax
import jax.numpy as jnp
from jax.experimental import pallas as pl
from jax.experimental.pallas import tpu as pltpu

D_FEAT = 6
HIDDEN = 32
T_STEPS = 8
N_STOCKS = 8
NUM_RELATION = 8


def _gru_gates(gi, gh, h_prev, H):
    # PyTorch GRU gate order (r, z, n) and update rule:
    #   n = tanh(gi_n + r * gh_n);  h' = (1 - z) * n + z * h_prev
    r = jax.nn.sigmoid(gi[:, 0:H] + gh[:, 0:H])
    z = jax.nn.sigmoid(gi[:, H:2 * H] + gh[:, H:2 * H])
    n = jnp.tanh(gi[:, 2 * H:3 * H] + r * gh[:, 2 * H:3 * H])
    return (1.0 - z) * n + z * h_prev


def rsr_kernel(x_ref,
               w_ih0_ref, w_hh0_ref, b_ih0_ref, b_hh0_ref,
               w_ih1_ref, w_hh1_ref, b_ih1_ref, b_hh1_ref,
               rel_ref, w_head_ref, w_fc2_ref, scal_ref,
               out_ref):
    TN = x_ref.shape[0]
    H = w_hh0_ref.shape[0]
    N = out_ref.shape[0]
    T = TN // N
    R = rel_ref.shape[0]

    # ---- 2-layer GRU over time (batch_first semantics, dropout=0) ----
    # Hoisted layer-0 input projection: one well-shaped matmul (bias folded in)
    # instead of T tiny matmuls + bias broadcasts on the serial recurrent path.
    gi0_all = jnp.dot(x_ref[...], w_ih0_ref[...],
                      preferred_element_type=jnp.float32) + b_ih0_ref[...]   # (T*N, 3H)

    w_hh0 = w_hh0_ref[...]
    w_ih1 = w_ih1_ref[...]
    w_hh1 = w_hh1_ref[...]
    # Hoist bias broadcasts out of the unrolled loop.
    b_hh0 = jnp.broadcast_to(b_hh0_ref[...], (N, 3 * H))
    b_ih1 = jnp.broadcast_to(b_ih1_ref[...], (N, 3 * H))
    b_hh1 = jnp.broadcast_to(b_hh1_ref[...], (N, 3 * H))

    h0 = jnp.zeros((N, H), jnp.float32)
    h1 = jnp.zeros((N, H), jnp.float32)
    # Fully unrolled recurrence (T static & small): gives the scheduler
    # cross-step visibility; gi0 slices are static row picks at multiples of N.
    for t in range(T):
        gi0 = gi0_all[t * N:(t + 1) * N, :]
        gh0 = jnp.dot(h0, w_hh0, preferred_element_type=jnp.float32) + b_hh0
        h0 = _gru_gates(gi0, gh0, h0, H)
        gi1 = jnp.dot(h0, w_ih1, preferred_element_type=jnp.float32) + b_ih1
        gh1 = jnp.dot(h1, w_hh1, preferred_element_type=jnp.float32) + b_hh1
        h1 = _gru_gates(gi1, gh1, h1, H)

    hidden = h1                                                  # == rnn_out[:, -1, :]

    # ---- relation-attention head ----
    # Merged projections: columns of w_head are [W[:H] | W[H:2H] | fc_w[:H]].
    s = jnp.dot(hidden, w_head_ref[...], preferred_element_type=jnp.float32)  # (N, 3)
    s_e = s[:, 0:1]          # W[:H]   . x_hidden[i]   (row term)
    s_h = s[:, 1:2]          # W[H:2H] . x_hidden[j]   (column term)
    fc_top = s[:, 2:3]       # fc_w[:H]. x_hidden[i]

    # Relation term and mask: per-relation (N, N) slabs scaled by SMEM scalars
    # (splat-multiply; no 3-D relayout / reshape inside the kernel).
    rel_score = jnp.zeros((N, N), jnp.float32)
    rel_sum = jnp.zeros((N, N), jnp.float32)
    for k in range(R):
        rk = rel_ref[k]                                   # (N, N)
        rel_score = rel_score + rk * scal_ref[0, k]       # scalar splat from SMEM
        rel_sum = rel_sum + rk

    # weight[i, j] = W_e.x[i] + W_h.x[j] + W_r.relation[i,j,:] + b
    weight = s_e + jnp.transpose(s_h) + rel_score + scal_ref[0, R]
    weight = jnp.where(weight >= 0, weight, 0.01 * weight)       # LeakyReLU(0.01)

    # mask[i, j] = 1 iff sum_k relation[i, j, k] != 0  (torch nonzero semantics)
    mask = jnp.where(rel_sum != 0.0, 1.0, 0.0).astype(jnp.float32)
    temp = mask * weight
    temp = jnp.where(temp == 0.0, -10000.0, temp)

    # softmax over dim=1, then re-mask (matches torch)
    m = jnp.max(temp, axis=1, keepdims=True)
    e = jnp.exp(temp - m)
    denom = jnp.sum(e, axis=1, keepdims=True)
    valid = e * pl.reciprocal(denom, approx=True)
    valid = valid * mask

    h_att = jnp.dot(valid, hidden, preferred_element_type=jnp.float32)        # (N, H)
    # fc(cat(x_hidden, h_att)) == x_hidden @ fc_w[:H] + h_att @ fc_w[H:] + b_fc
    out = fc_top + jnp.dot(h_att, w_fc2_ref[...],
                           preferred_element_type=jnp.float32) + scal_ref[0, R + 1]
    out_ref[...] = out                                           # (N, 1)


def init_params(key, d_feat=D_FEAT, hidden=HIDDEN, num_relation=NUM_RELATION):
    ks = jax.random.split(key, 12)
    s = 1.0 / jnp.sqrt(hidden)
    u = lambda k, shape: jax.random.uniform(k, shape, jnp.float32, -s, s)
    return {
        # GRU layer 0 (weights stored transposed: (in, 3H)), biases as (1, 3H)
        'w_ih0': u(ks[0], (d_feat, 3 * hidden)),
        'w_hh0': u(ks[1], (hidden, 3 * hidden)),
        'b_ih0': u(ks[2], (1, 3 * hidden)),
        'b_hh0': u(ks[3], (1, 3 * hidden)),
        # GRU layer 1
        'w_ih1': u(ks[4], (hidden, 3 * hidden)),
        'w_hh1': u(ks[5], (hidden, 3 * hidden)),
        'b_ih1': u(ks[6], (1, 3 * hidden)),
        'b_hh1': u(ks[7], (1, 3 * hidden)),
        # attention weight W: (2H + num_relation, 1) (xavier-ish uniform)
        'W': u(ks[8], (2 * hidden + num_relation, 1)),
        # scalar bias b (torch init: 0)
        'b_att': jnp.zeros((1, 1), jnp.float32),
        # fc: Linear(2H, 1) stored transposed as (2H, 1)
        'w_fc': u(ks[9], (2 * hidden, 1)),
        'b_fc': u(ks[10], (1, 1)),
    }


@functools.partial(jax.jit, static_argnames=('d_feat',))
def rsr_forward(x, relation, params, d_feat=D_FEAT):
    N = x.shape[0]
    H = params['w_hh0'].shape[0]
    R = relation.shape[2]
    # torch: x.reshape(N, d_feat, -1).permute(0, 2, 1) -> (N, T, d_feat)
    xt = x.reshape(N, d_feat, -1).transpose(0, 2, 1).astype(jnp.float32)
    T = xt.shape[1]
    # time-major flattened (T*N, d_feat): step t lives in rows [t*N, (t+1)*N)
    x_flat = jnp.transpose(xt, (1, 0, 2)).reshape(T * N, d_feat)
    # relation -> (R, N, N) so rel_ref[k] is a clean 2-D slab in the kernel
    rel_t = jnp.transpose(relation, (2, 0, 1)).astype(jnp.float32)
    W = params['W']
    wfc = params['w_fc']
    # merged head projection: [W_e | W_h | fc_w_top] -> (H, 3)
    w_head = jnp.concatenate([W[:H], W[H:2 * H], wfc[:H]], axis=1)
    # scalars row for SMEM: [w_rel_0 .. w_rel_{R-1}, b_att, b_fc]
    scalars = jnp.concatenate(
        [W[2 * H:, 0], params['b_att'].reshape(1), params['b_fc'].reshape(1)]
    ).reshape(1, R + 2).astype(jnp.float32)

    args = (x_flat,
            params['w_ih0'], params['w_hh0'], params['b_ih0'], params['b_hh0'],
            params['w_ih1'], params['w_hh1'], params['b_ih1'], params['b_hh1'],
            rel_t, w_head, wfc[H:2 * H], scalars)
    vmem = pl.BlockSpec(memory_space=pltpu.MemorySpace.VMEM)
    smem = pl.BlockSpec(memory_space=pltpu.MemorySpace.SMEM)
    in_specs = [vmem] * (len(args) - 1) + [smem]
    out = pl.pallas_call(
        rsr_kernel,
        out_shape=jax.ShapeDtypeStruct((N, 1), jnp.float32),
        in_specs=in_specs,
        out_specs=vmem,
    )(*args)
    return out[:, 0]                                             # .squeeze()


def rsr_reference(x, relation, params, d_feat=D_FEAT):
    """Pure-JAX reference mirroring the PyTorch RSR.forward, for a sanity check."""
    N = x.shape[0]
    H = params['w_hh0'].shape[0]
    xt = x.reshape(N, d_feat, -1).transpose(0, 2, 1).astype(jnp.float32)   # (N, T, d_feat)
    T = xt.shape[1]

    def step(x_t, h, wi, wh, bi, bh):
        gi = x_t @ wi + bi
        gh = h @ wh + bh
        r = jax.nn.sigmoid(gi[:, :H] + gh[:, :H])
        z = jax.nn.sigmoid(gi[:, H:2 * H] + gh[:, H:2 * H])
        n = jnp.tanh(gi[:, 2 * H:] + r * gh[:, 2 * H:])
        return (1 - z) * n + z * h

    h0 = jnp.zeros((N, H), jnp.float32)
    h1 = jnp.zeros((N, H), jnp.float32)
    for t in range(T):
        h0 = step(xt[:, t, :], h0, params['w_ih0'], params['w_hh0'],
                  params['b_ih0'], params['b_hh0'])
        h1 = step(h0, h1, params['w_ih1'], params['w_hh1'],
                  params['b_ih1'], params['b_hh1'])
    x_hidden = h1                                                # (N, H)

    ei = jnp.repeat(x_hidden[:, None, :], N, axis=1)             # (N, N, H)
    hb = jnp.repeat(x_hidden[None, :, :], N, axis=0)             # (N, N, H)
    matrix = jnp.concatenate([ei, hb, relation.astype(jnp.float32)], axis=2)
    weight = (matrix @ params['W'])[:, :, 0] + params['b_att'][0, 0]
    weight = jnp.where(weight >= 0, weight, 0.01 * weight)       # LeakyReLU
    mask = (jnp.sum(relation, axis=2) != 0).astype(jnp.float32)
    temp = mask * weight
    temp = jnp.where(temp == 0, -10000.0, temp)
    valid = jax.nn.softmax(temp, axis=1) * mask
    hidden = valid @ x_hidden
    hidden = jnp.concatenate([x_hidden, hidden], axis=1)
    return (hidden @ params['w_fc'] + params['b_fc'])[:, 0]


if __name__ == "__main__":
    key = jax.random.PRNGKey(0)
    k_x, k_r, k_p = jax.random.split(key, 3)
    # x: (num_stocks, d_feat * T) like qlib feature matrices
    x = jax.random.normal(k_x, (N_STOCKS, D_FEAT * T_STEPS), jnp.float32)
    # sparse binary relation tensor: (num_stocks, num_stocks, num_relation)
    relation = (jax.random.uniform(k_r, (N_STOCKS, N_STOCKS, NUM_RELATION))
                > 0.7).astype(jnp.float32)
    params = init_params(k_p)

    out = rsr_forward(x, relation, params)
    out = jax.block_until_ready(out)

    ref = rsr_reference(x, relation, params)
    assert out.shape == (N_STOCKS,)
    # tolerance accounts for the approx-reciprocal softmax denominator
    assert jnp.allclose(out, ref, atol=2e-3, rtol=2e-3), (out, ref)
    print("KERNEL_OK")
</pallas_src>

<mosaic_0001>
module attributes {stable_mosaic.version = 11 : i64} {
  func.func @rsr_kernel(%arg0: memref<64x6xf32, #tpu.memory_space<vmem>>, %arg1: memref<6x96xf32, #tpu.memory_space<vmem>>, %arg2: memref<32x96xf32, #tpu.memory_space<vmem>>, %arg3: memref<1x96xf32, #tpu.memory_space<vmem>>, %arg4: memref<1x96xf32, #tpu.memory_space<vmem>>, %arg5: memref<32x96xf32, #tpu.memory_space<vmem>>, %arg6: memref<32x96xf32, #tpu.memory_space<vmem>>, %arg7: memref<1x96xf32, #tpu.memory_space<vmem>>, %arg8: memref<1x96xf32, #tpu.memory_space<vmem>>, %arg9: memref<8x8x8xf32, #tpu.memory_space<vmem>>, %arg10: memref<32x3xf32, #tpu.memory_space<vmem>>, %arg11: memref<32x1xf32, #tpu.memory_space<vmem>>, %arg12: memref<1x10xf32, #tpu.memory_space<smem>>, %arg13: memref<8x1xf32, #tpu.memory_space<vmem>>) attributes {dimension_semantics = [], scalar_prefetch = 0 : i64, scratch_operands = 0 : i64, tpu.core_type = #tpu.core_type<tc>} {
    %c0 = arith.constant 0 : index
    %c0_0 = arith.constant 0 : index
    %0 = vector.load %arg0[%c0, %c0_0] : memref<64x6xf32, #tpu.memory_space<vmem>>, vector<64x6xf32>
    %c0_1 = arith.constant 0 : index
    %c0_2 = arith.constant 0 : index
    %1 = vector.load %arg1[%c0_1, %c0_2] : memref<6x96xf32, #tpu.memory_space<vmem>>, vector<6x96xf32>
    %cst = arith.constant dense<0.000000e+00> : vector<64x96xf32>
    %2 = tpu.matmul %0, %1, %cst {dimension_numbers = #tpu.dot_dimension_numbers<[1], [0], [0], [1], [0, 0, 1, 1], [], []>} : vector<64x6xf32>, vector<6x96xf32>, vector<64x96xf32> -> vector<64x96xf32>
    %c0_3 = arith.constant 0 : index
    %c0_4 = arith.constant 0 : index
    %3 = vector.load %arg3[%c0_3, %c0_4] : memref<1x96xf32, #tpu.memory_space<vmem>>, vector<1x96xf32>
    %4 = vector.broadcast %3 : vector<1x96xf32> to vector<64x96xf32>
    %5 = arith.addf %2, %4 : vector<64x96xf32>
    %c0_5 = arith.constant 0 : index
    %c0_6 = arith.constant 0 : index
    %6 = vector.load %arg2[%c0_5, %c0_6] : memref<32x96xf32, #tpu.memory_space<vmem>>, vector<32x96xf32>
    %c0_7 = arith.constant 0 : index
    %c0_8 = arith.constant 0 : index
    %7 = vector.load %arg5[%c0_7, %c0_8] : memref<32x96xf32, #tpu.memory_space<vmem>>, vector<32x96xf32>
    %c0_9 = arith.constant 0 : index
    %c0_10 = arith.constant 0 : index
    %8 = vector.load %arg6[%c0_9, %c0_10] : memref<32x96xf32, #tpu.memory_space<vmem>>, vector<32x96xf32>
    %c0_11 = arith.constant 0 : index
    %c0_12 = arith.constant 0 : index
    %9 = vector.load %arg4[%c0_11, %c0_12] : memref<1x96xf32, #tpu.memory_space<vmem>>, vector<1x96xf32>
    %10 = vector.shape_cast %9 : vector<1x96xf32> to vector<1x96xf32>
    %11 = vector.broadcast %10 : vector<1x96xf32> to vector<8x96xf32>
    %c0_13 = arith.constant 0 : index
    %c0_14 = arith.constant 0 : index
    %12 = vector.load %arg7[%c0_13, %c0_14] : memref<1x96xf32, #tpu.memory_space<vmem>>, vector<1x96xf32>
    %13 = vector.shape_cast %12 : vector<1x96xf32> to vector<1x96xf32>
    %14 = vector.broadcast %13 : vector<1x96xf32> to vector<8x96xf32>
    %c0_15 = arith.constant 0 : index
    %c0_16 = arith.constant 0 : index
    %15 = vector.load %arg8[%c0_15, %c0_16] : memref<1x96xf32, #tpu.memory_space<vmem>>, vector<1x96xf32>
    %16 = vector.shape_cast %15 : vector<1x96xf32> to vector<1x96xf32>
    %17 = vector.broadcast %16 : vector<1x96xf32> to vector<8x96xf32>
    %cst_17 = arith.constant 0.000000e+00 : f32
    %18 = vector.broadcast %cst_17 : f32 to vector<8x32xf32>
    %cst_18 = arith.constant 0.000000e+00 : f32
    %19 = vector.broadcast %cst_18 : f32 to vector<8x32xf32>
    %20 = vector.extract_strided_slice %5 {offsets = [0, 0], sizes = [8, 96], strides = [1, 1]} : vector<64x96xf32> to vector<8x96xf32>
    %cst_19 = arith.constant dense<0.000000e+00> : vector<8x96xf32>
    %21 = tpu.matmul %18, %6, %cst_19 {dimension_numbers = #tpu.dot_dimension_numbers<[1], [0], [0], [1], [0, 0, 1, 1], [], []>} : vector<8x32xf32>, vector<32x96xf32>, vector<8x96xf32> -> vector<8x96xf32>
    %22 = arith.addf %21, %11 : vector<8x96xf32>
    %23 = vector.extract_strided_slice %20 {offsets = [0, 0], sizes = [8, 32], strides = [1, 1]} : vector<8x96xf32> to vector<8x32xf32>
    %24 = vector.extract_strided_slice %22 {offsets = [0, 0], sizes = [8, 32], strides = [1, 1]} : vector<8x96xf32> to vector<8x32xf32>
    %25 = arith.addf %23, %24 : vector<8x32xf32>
    %26 = arith.negf %25 : vector<8x32xf32>
    %27 = math.exp %26 : vector<8x32xf32>
    %cst_20 = arith.constant 1.000000e+00 : f32
    %28 = vector.broadcast %cst_20 : f32 to vector<8x32xf32>
    %29 = arith.addf %28, %27 : vector<8x32xf32>
    %30 = arith.divf %28, %29 : vector<8x32xf32>
    %31 = vector.extract_strided_slice %20 {offsets = [0, 32], sizes = [8, 32], strides = [1, 1]} : vector<8x96xf32> to vector<8x32xf32>
    %32 = vector.extract_strided_slice %22 {offsets = [0, 32], sizes = [8, 32], strides = [1, 1]} : vector<8x96xf32> to vector<8x32xf32>
    %33 = arith.addf %31, %32 : vector<8x32xf32>
    %34 = arith.negf %33 : vector<8x32xf32>
    %35 = math.exp %34 : vector<8x32xf32>
    %cst_21 = arith.constant 1.000000e+00 : f32
    %36 = vector.broadcast %cst_21 : f32 to vector<8x32xf32>
    %37 = arith.addf %36, %35 : vector<8x32xf32>
    %38 = arith.divf %36, %37 : vector<8x32xf32>
    %39 = vector.extract_strided_slice %20 {offsets = [0, 64], sizes = [8, 32], strides = [1, 1]} : vector<8x96xf32> to vector<8x32xf32>
    %40 = vector.extract_strided_slice %22 {offsets = [0, 64], sizes = [8, 32], strides = [1, 1]} : vector<8x96xf32> to vector<8x32xf32>
    %41 = arith.mulf %30, %40 : vector<8x32xf32>
    %42 = arith.addf %39, %41 : vector<8x32xf32>
    %43 = math.tanh %42 : vector<8x32xf32>
    %cst_22 = arith.constant 1.000000e+00 : f32
    %44 = vector.broadcast %cst_22 : f32 to vector<8x32xf32>
    %45 = arith.subf %44, %38 : vector<8x32xf32>
    %46 = arith.mulf %45, %43 : vector<8x32xf32>
    %47 = arith.mulf %38, %18 : vector<8x32xf32>
    %48 = arith.addf %46, %47 : vector<8x32xf32>
    %cst_23 = arith.constant dense<0.000000e+00> : vector<8x96xf32>
    %49 = tpu.matmul %48, %7, %cst_23 {dimension_numbers = #tpu.dot_dimension_numbers<[1], [0], [0], [1], [0, 0, 1, 1], [], []>} : vector<8x32xf32>, vector<32x96xf32>, vector<8x96xf32> -> vector<8x96xf32>
    %50 = arith.addf %49, %14 : vector<8x96xf32>
    %cst_24 = arith.constant dense<0.000000e+00> : vector<8x96xf32>
    %51 = tpu.matmul %19, %8, %cst_24 {dimension_numbers = #tpu.dot_dimension_numbers<[1], [0], [0], [1], [0, 0, 1, 1], [], []>} : vector<8x32xf32>, vector<32x96xf32>, vector<8x96xf32> -> vector<8x96xf32>
    %52 = arith.addf %51, %17 : vector<8x96xf32>
    %53 = vector.extract_strided_slice %50 {offsets = [0, 0], sizes = [8, 32], strides = [1, 1]} : vector<8x96xf32> to vector<8x32xf32>
    %54 = vector.extract_strided_slice %52 {offsets = [0, 0], sizes = [8, 32], strides = [1, 1]} : vector<8x96xf32> to vector<8x32xf32>
    %55 = arith.addf %53, %54 : vector<8x32xf32>
    %56 = arith.negf %55 : vector<8x32xf32>
    %57 = math.exp %56 : vector<8x32xf32>
    %cst_25 = arith.constant 1.000000e+00 : f32
    %58 = vector.broadcast %cst_25 : f32 to vector<8x32xf32>
    %59 = arith.addf %58, %57 : vector<8x32xf32>
    %60 = arith.divf %58, %59 : vector<8x32xf32>
    %61 = vector.extract_strided_slice %50 {offsets = [0, 32], sizes = [8, 32], strides = [1, 1]} : vector<8x96xf32> to vector<8x32xf32>
    %62 = vector.extract_strided_slice %52 {offsets = [0, 32], sizes = [8, 32], strides = [1, 1]} : vector<8x96xf32> to vector<8x32xf32>
    %63 = arith.addf %61, %62 : vector<8x32xf32>
    %64 = arith.negf %63 : vector<8x32xf32>
    %65 = math.exp %64 : vector<8x32xf32>
    %cst_26 = arith.constant 1.000000e+00 : f32
    %66 = vector.broadcast %cst_26 : f32 to vector<8x32xf32>
    %67 = arith.addf %66, %65 : vector<8x32xf32>
    %68 = arith.divf %66, %67 : vector<8x32xf32>
    %69 = vector.extract_strided_slice %50 {offsets = [0, 64], sizes = [8, 32], strides = [1, 1]} : vector<8x96xf32> to vector<8x32xf32>
    %70 = vector.extract_strided_slice %52 {offsets = [0, 64], sizes = [8, 32], strides = [1, 1]} : vector<8x96xf32> to vector<8x32xf32>
    %71 = arith.mulf %60, %70 : vector<8x32xf32>
    %72 = arith.addf %69, %71 : vector<8x32xf32>
    %73 = math.tanh %72 : vector<8x32xf32>
    %cst_27 = arith.constant 1.000000e+00 : f32
    %74 = vector.broadcast %cst_27 : f32 to vector<8x32xf32>
    %75 = arith.subf %74, %68 : vector<8x32xf32>
    %76 = arith.mulf %75, %73 : vector<8x32xf32>
    %77 = arith.mulf %68, %19 : vector<8x32xf32>
    %78 = arith.addf %76, %77 : vector<8x32xf32>
    %79 = vector.extract_strided_slice %5 {offsets = [8, 0], sizes = [8, 96], strides = [1, 1]} : vector<64x96xf32> to vector<8x96xf32>
    %cst_28 = arith.constant dense<0.000000e+00> : vector<8x96xf32>
    %80 = tpu.matmul %48, %6, %cst_28 {dimension_numbers = #tpu.dot_dimension_numbers<[1], [0], [0], [1], [0, 0, 1, 1], [], []>} : vector<8x32xf32>, vector<32x96xf32>, vector<8x96xf32> -> vector<8x96xf32>
    %81 = arith.addf %80, %11 : vector<8x96xf32>
    %82 = vector.extract_strided_slice %79 {offsets = [0, 0], sizes = [8, 32], strides = [1, 1]} : vector<8x96xf32> to vector<8x32xf32>
    %83 = vector.extract_strided_slice %81 {offsets = [0, 0], sizes = [8, 32], strides = [1, 1]} : vector<8x96xf32> to vector<8x32xf32>
    %84 = arith.addf %82, %83 : vector<8x32xf32>
    %85 = arith.negf %84 : vector<8x32xf32>
    %86 = math.exp %85 : vector<8x32xf32>
    %cst_29 = arith.constant 1.000000e+00 : f32
    %87 = vector.broadcast %cst_29 : f32 to vector<8x32xf32>
    %88 = arith.addf %87, %86 : vector<8x32xf32>
    %89 = arith.divf %87, %88 : vector<8x32xf32>
    %90 = vector.extract_strided_slice %79 {offsets = [0, 32], sizes = [8, 32], strides = [1, 1]} : vector<8x96xf32> to vector<8x32xf32>
    %91 = vector.extract_strided_slice %81 {offsets = [0, 32], sizes = [8, 32], strides = [1, 1]} : vector<8x96xf32> to vector<8x32xf32>
    %92 = arith.addf %90, %91 : vector<8x32xf32>
    %93 = arith.negf %92 : vector<8x32xf32>
    %94 = math.exp %93 : vector<8x32xf32>
    %cst_30 = arith.constant 1.000000e+00 : f32
    %95 = vector.broadcast %cst_30 : f32 to vector<8x32xf32>
    %96 = arith.addf %95, %94 : vector<8x32xf32>
    %97 = arith.divf %95, %96 : vector<8x32xf32>
    %98 = vector.extract_strided_slice %79 {offsets = [0, 64], sizes = [8, 32], strides = [1, 1]} : vector<8x96xf32> to vector<8x32xf32>
    %99 = vector.extract_strided_slice %81 {offsets = [0, 64], sizes = [8, 32], strides = [1, 1]} : vector<8x96xf32> to vector<8x32xf32>
    %100 = arith.mulf %89, %99 : vector<8x32xf32>
    %101 = arith.addf %98, %100 : vector<8x32xf32>
    %102 = math.tanh %101 : vector<8x32xf32>
    %cst_31 = arith.constant 1.000000e+00 : f32
    %103 = vector.broadcast %cst_31 : f32 to vector<8x32xf32>
    %104 = arith.subf %103, %97 : vector<8x32xf32>
    %105 = arith.mulf %104, %102 : vector<8x32xf32>
    %106 = arith.mulf %97, %48 : vector<8x32xf32>
    %107 = arith.addf %105, %106 : vector<8x32xf32>
    %cst_32 = arith.constant dense<0.000000e+00> : vector<8x96xf32>
    %108 = tpu.matmul %107, %7, %cst_32 {dimension_numbers = #tpu.dot_dimension_numbers<[1], [0], [0], [1], [0, 0, 1, 1], [], []>} : vector<8x32xf32>, vector<32x96xf32>, vector<8x96xf32> -> vector<8x96xf32>
    %109 = arith.addf %108, %14 : vector<8x96xf32>
    %cst_33 = arith.constant dense<0.000000e+00> : vector<8x96xf32>
    %110 = tpu.matmul %78, %8, %cst_33 {dimension_numbers = #tpu.dot_dimension_numbers<[1], [0], [0], [1], [0, 0, 1, 1], [], []>} : vector<8x32xf32>, vector<32x96xf32>, vector<8x96xf32> -> vector<8x96xf32>
    %111 = arith.addf %110, %17 : vector<8x96xf32>
    %112 = vector.extract_strided_slice %109 {offsets = [0, 0], sizes = [8, 32], strides = [1, 1]} : vector<8x96xf32> to vector<8x32xf32>
    %113 = vector.extract_strided_slice %111 {offsets = [0, 0], sizes = [8, 32], strides = [1, 1]} : vector<8x96xf32> to vector<8x32xf32>
    %114 = arith.addf %112, %113 : vector<8x32xf32>
    %115 = arith.negf %114 : vector<8x32xf32>
    %116 = math.exp %115 : vector<8x32xf32>
    %cst_34 = arith.constant 1.000000e+00 : f32
    %117 = vector.broadcast %cst_34 : f32 to vector<8x32xf32>
    %118 = arith.addf %117, %116 : vector<8x32xf32>
    %119 = arith.divf %117, %118 : vector<8x32xf32>
    %120 = vector.extract_strided_slice %109 {offsets = [0, 32], sizes = [8, 32], strides = [1, 1]} : vector<8x96xf32> to vector<8x32xf32>
    %121 = vector.extract_strided_slice %111 {offsets = [0, 32], sizes = [8, 32], strides = [1, 1]} : vector<8x96xf32> to vector<8x32xf32>
    %122 = arith.addf %120, %121 : vector<8x32xf32>
    %123 = arith.negf %122 : vector<8x32xf32>
    %124 = math.exp %123 : vector<8x32xf32>
    %cst_35 = arith.constant 1.000000e+00 : f32
    %125 = vector.broadcast %cst_35 : f32 to vector<8x32xf32>
    %126 = arith.addf %125, %124 : vector<8x32xf32>
    %127 = arith.divf %125, %126 : vector<8x32xf32>
    %128 = vector.extract_strided_slice %109 {offsets = [0, 64], sizes = [8, 32], strides = [1, 1]} : vector<8x96xf32> to vector<8x32xf32>
    %129 = vector.extract_strided_slice %111 {offsets = [0, 64], sizes = [8, 32], strides = [1, 1]} : vector<8x96xf32> to vector<8x32xf32>
    %130 = arith.mulf %119, %129 : vector<8x32xf32>
    %131 = arith.addf %128, %130 : vector<8x32xf32>
    %132 = math.tanh %131 : vector<8x32xf32>
    %cst_36 = arith.constant 1.000000e+00 : f32
    %133 = vector.broadcast %cst_36 : f32 to vector<8x32xf32>
    %134 = arith.subf %133, %127 : vector<8x32xf32>
    %135 = arith.mulf %134, %132 : vector<8x32xf32>
    %136 = arith.mulf %127, %78 : vector<8x32xf32>
    %137 = arith.addf %135, %136 : vector<8x32xf32>
    %138 = vector.extract_strided_slice %5 {offsets = [16, 0], sizes = [8, 96], strides = [1, 1]} : vector<64x96xf32> to vector<8x96xf32>
    %cst_37 = arith.constant dense<0.000000e+00> : vector<8x96xf32>
    %139 = tpu.matmul %107, %6, %cst_37 {dimension_numbers = #tpu.dot_dimension_numbers<[1], [0], [0], [1], [0, 0, 1, 1], [], []>} : vector<8x32xf32>, vector<32x96xf32>, vector<8x96xf32> -> vector<8x96xf32>
    %140 = arith.addf %139, %11 : vector<8x96xf32>
    %141 = vector.extract_strided_slice %138 {offsets = [0, 0], sizes = [8, 32], strides = [1, 1]} : vector<8x96xf32> to vector<8x32xf32>
    %142 = vector.extract_strided_slice %140 {offsets = [0, 0], sizes = [8, 32], strides = [1, 1]} : vector<8x96xf32> to vector<8x32xf32>
    %143 = arith.addf %141, %142 : vector<8x32xf32>
    %144 = arith.negf %143 : vector<8x32xf32>
    %145 = math.exp %144 : vector<8x32xf32>
    %cst_38 = arith.constant 1.000000e+00 : f32
    %146 = vector.broadcast %cst_38 : f32 to vector<8x32xf32>
    %147 = arith.addf %146, %145 : vector<8x32xf32>
    %148 = arith.divf %146, %147 : vector<8x32xf32>
    %149 = vector.extract_strided_slice %138 {offsets = [0, 32], sizes = [8, 32], strides = [1, 1]} : vector<8x96xf32> to vector<8x32xf32>
    %150 = vector.extract_strided_slice %140 {offsets = [0, 32], sizes = [8, 32], strides = [1, 1]} : vector<8x96xf32> to vector<8x32xf32>
    %151 = arith.addf %149, %150 : vector<8x32xf32>
    %152 = arith.negf %151 : vector<8x32xf32>
    %153 = math.exp %152 : vector<8x32xf32>
    %cst_39 = arith.constant 1.000000e+00 : f32
    %154 = vector.broadcast %cst_39 : f32 to vector<8x32xf32>
    %155 = arith.addf %154, %153 : vector<8x32xf32>
    %156 = arith.divf %154, %155 : vector<8x32xf32>
    %157 = vector.extract_strided_slice %138 {offsets = [0, 64], sizes = [8, 32], strides = [1, 1]} : vector<8x96xf32> to vector<8x32xf32>
    %158 = vector.extract_strided_slice %140 {offsets = [0, 64], sizes = [8, 32], strides = [1, 1]} : vector<8x96xf32> to vector<8x32xf32>
    %159 = arith.mulf %148, %158 : vector<8x32xf32>
    %160 = arith.addf %157, %159 : vector<8x32xf32>
    %161 = math.tanh %160 : vector<8x32xf32>
    %cst_40 = arith.constant 1.000000e+00 : f32
    %162 = vector.broadcast %cst_40 : f32 to vector<8x32xf32>
    %163 = arith.subf %162, %156 : vector<8x32xf32>
    %164 = arith.mulf %163, %161 : vector<8x32xf32>
    %165 = arith.mulf %156, %107 : vector<8x32xf32>
    %166 = arith.addf %164, %165 : vector<8x32xf32>
    %cst_41 = arith.constant dense<0.000000e+00> : vector<8x96xf32>
    %167 = tpu.matmul %166, %7, %cst_41 {dimension_numbers = #tpu.dot_dimension_numbers<[1], [0], [0], [1], [0, 0, 1, 1], [], []>} : vector<8x32xf32>, vector<32x96xf32>, vector<8x96xf32> -> vector<8x96xf32>
    %168 = arith.addf %167, %14 : vector<8x96xf32>
    %cst_42 = arith.constant dense<0.000000e+00> : vector<8x96xf32>
    %169 = tpu.matmul %137, %8, %cst_42 {dimension_numbers = #tpu.dot_dimension_numbers<[1], [0], [0], [1], [0, 0, 1, 1], [], []>} : vector<8x32xf32>, vector<32x96xf32>, vector<8x96xf32> -> vector<8x96xf32>
    %170 = arith.addf %169, %17 : vector<8x96xf32>
    %171 = vector.extract_strided_slice %168 {offsets = [0, 0], sizes = [8, 32], strides = [1, 1]} : vector<8x96xf32> to vector<8x32xf32>
    %172 = vector.extract_strided_slice %170 {offsets = [0, 0], sizes = [8, 32], strides = [1, 1]} : vector<8x96xf32> to vector<8x32xf32>
    %173 = arith.addf %171, %172 : vector<8x32xf32>
    %174 = arith.negf %173 : vector<8x32xf32>
    %175 = math.exp %174 : vector<8x32xf32>
    %cst_43 = arith.constant 1.000000e+00 : f32
    %176 = vector.broadcast %cst_43 : f32 to vector<8x32xf32>
    %177 = arith.addf %176, %175 : vector<8x32xf32>
    %178 = arith.divf %176, %177 : vector<8x32xf32>
    %179 = vector.extract_strided_slice %168 {offsets = [0, 32], sizes = [8, 32], strides = [1, 1]} : vector<8x96xf32> to vector<8x32xf32>
    %180 = vector.extract_strided_slice %170 {offsets = [0, 32], sizes = [8, 32], strides = [1, 1]} : vector<8x96xf32> to vector<8x32xf32>
    %181 = arith.addf %179, %180 : vector<8x32xf32>
    %182 = arith.negf %181 : vector<8x32xf32>
    %183 = math.exp %182 : vector<8x32xf32>
    %cst_44 = arith.constant 1.000000e+00 : f32
    %184 = vector.broadcast %cst_44 : f32 to vector<8x32xf32>
    %185 = arith.addf %184, %183 : vector<8x32xf32>
    %186 = arith.divf %184, %185 : vector<8x32xf32>
    %187 = vector.extract_strided_slice %168 {offsets = [0, 64], sizes = [8, 32], strides = [1, 1]} : vector<8x96xf32> to vector<8x32xf32>
    %188 = vector.extract_strided_slice %170 {offsets = [0, 64], sizes = [8, 32], strides = [1, 1]} : vector<8x96xf32> to vector<8x32xf32>
    %189 = arith.mulf %178, %188 : vector<8x32xf32>
    %190 = arith.addf %187, %189 : vector<8x32xf32>
    %191 = math.tanh %190 : vector<8x32xf32>
    %cst_45 = arith.constant 1.000000e+00 : f32
    %192 = vector.broadcast %cst_45 : f32 to vector<8x32xf32>
    %193 = arith.subf %192, %186 : vector<8x32xf32>
    %194 = arith.mulf %193, %191 : vector<8x32xf32>
    %195 = arith.mulf %186, %137 : vector<8x32xf32>
    %196 = arith.addf %194, %195 : vector<8x32xf32>
    %197 = vector.extract_strided_slice %5 {offsets = [24, 0], sizes = [8, 96], strides = [1, 1]} : vector<64x96xf32> to vector<8x96xf32>
    %cst_46 = arith.constant dense<0.000000e+00> : vector<8x96xf32>
    %198 = tpu.matmul %166, %6, %cst_46 {dimension_numbers = #tpu.dot_dimension_numbers<[1], [0], [0], [1], [0, 0, 1, 1], [], []>} : vector<8x32xf32>, vector<32x96xf32>, vector<8x96xf32> -> vector<8x96xf32>
    %199 = arith.addf %198, %11 : vector<8x96xf32>
    %200 = vector.extract_strided_slice %197 {offsets = [0, 0], sizes = [8, 32], strides = [1, 1]} : vector<8x96xf32> to vector<8x32xf32>
    %201 = vector.extract_strided_slice %199 {offsets = [0, 0], sizes = [8, 32], strides = [1, 1]} : vector<8x96xf32> to vector<8x32xf32>
    %202 = arith.addf %200, %201 : vector<8x32xf32>
    %203 = arith.negf %202 : vector<8x32xf32>
    %204 = math.exp %203 : vector<8x32xf32>
    %cst_47 = arith.constant 1.000000e+00 : f32
    %205 = vector.broadcast %cst_47 : f32 to vector<8x32xf32>
    %206 = arith.addf %205, %204 : vector<8x32xf32>
    %207 = arith.divf %205, %206 : vector<8x32xf32>
    %208 = vector.extract_strided_slice %197 {offsets = [0, 32], sizes = [8, 32], strides = [1, 1]} : vector<8x96xf32> to vector<8x32xf32>
    %209 = vector.extract_strided_slice %199 {offsets = [0, 32], sizes = [8, 32], strides = [1, 1]} : vector<8x96xf32> to vector<8x32xf32>
    %210 = arith.addf %208, %209 : vector<8x32xf32>
    %211 = arith.negf %210 : vector<8x32xf32>
    %212 = math.exp %211 : vector<8x32xf32>
    %cst_48 = arith.constant 1.000000e+00 : f32
    %213 = vector.broadcast %cst_48 : f32 to vector<8x32xf32>
    %214 = arith.addf %213, %212 : vector<8x32xf32>
    %215 = arith.divf %213, %214 : vector<8x32xf32>
    %216 = vector.extract_strided_slice %197 {offsets = [0, 64], sizes = [8, 32], strides = [1, 1]} : vector<8x96xf32> to vector<8x32xf32>
    %217 = vector.extract_strided_slice %199 {offsets = [0, 64], sizes = [8, 32], strides = [1, 1]} : vector<8x96xf32> to vector<8x32xf32>
    %218 = arith.mulf %207, %217 : vector<8x32xf32>
    %219 = arith.addf %216, %218 : vector<8x32xf32>
    %220 = math.tanh %219 : vector<8x32xf32>
    %cst_49 = arith.constant 1.000000e+00 : f32
    %221 = vector.broadcast %cst_49 : f32 to vector<8x32xf32>
    %222 = arith.subf %221, %215 : vector<8x32xf32>
    %223 = arith.mulf %222, %220 : vector<8x32xf32>
    %224 = arith.mulf %215, %166 : vector<8x32xf32>
    %225 = arith.addf %223, %224 : vector<8x32xf32>
    %cst_50 = arith.constant dense<0.000000e+00> : vector<8x96xf32>
    %226 = tpu.matmul %225, %7, %cst_50 {dimension_numbers = #tpu.dot_dimension_numbers<[1], [0], [0], [1], [0, 0, 1, 1], [], []>} : vector<8x32xf32>, vector<32x96xf32>, vector<8x96xf32> -> vector<8x96xf32>
    %227 = arith.addf %226, %14 : vector<8x96xf32>
    %cst_51 = arith.constant dense<0.000000e+00> : vector<8x96xf32>
    %228 = tpu.matmul %196, %8, %cst_51 {dimension_numbers = #tpu.dot_dimension_numbers<[1], [0], [0], [1], [0, 0, 1, 1], [], []>} : vector<8x32xf32>, vector<32x96xf32>, vector<8x96xf32> -> vector<8x96xf32>
    %229 = arith.addf %228, %17 : vector<8x96xf32>
    %230 = vector.extract_strided_slice %227 {offsets = [0, 0], sizes = [8, 32], strides = [1, 1]} : vector<8x96xf32> to vector<8x32xf32>
    %231 = vector.extract_strided_slice %229 {offsets = [0, 0], sizes = [8, 32], strides = [1, 1]} : vector<8x96xf32> to vector<8x32xf32>
    %232 = arith.addf %230, %231 : vector<8x32xf32>
    %233 = arith.negf %232 : vector<8x32xf32>
    %234 = math.exp %233 : vector<8x32xf32>
    %cst_52 = arith.constant 1.000000e+00 : f32
    %235 = vector.broadcast %cst_52 : f32 to vector<8x32xf32>
    %236 = arith.addf %235, %234 : vector<8x32xf32>
    %237 = arith.divf %235, %236 : vector<8x32xf32>
    %238 = vector.extract_strided_slice %227 {offsets = [0, 32], sizes = [8, 32], strides = [1, 1]} : vector<8x96xf32> to vector<8x32xf32>
    %239 = vector.extract_strided_slice %229 {offsets = [0, 32], sizes = [8, 32], strides = [1, 1]} : vector<8x96xf32> to vector<8x32xf32>
    %240 = arith.addf %238, %239 : vector<8x32xf32>
    %241 = arith.negf %240 : vector<8x32xf32>
    %242 = math.exp %241 : vector<8x32xf32>
    %cst_53 = arith.constant 1.000000e+00 : f32
    %243 = vector.broadcast %cst_53 : f32 to vector<8x32xf32>
    %244 = arith.addf %243, %242 : vector<8x32xf32>
    %245 = arith.divf %243, %244 : vector<8x32xf32>
    %246 = vector.extract_strided_slice %227 {offsets = [0, 64], sizes = [8, 32], strides = [1, 1]} : vector<8x96xf32> to vector<8x32xf32>
    %247 = vector.extract_strided_slice %229 {offsets = [0, 64], sizes = [8, 32], strides = [1, 1]} : vector<8x96xf32> to vector<8x32xf32>
    %248 = arith.mulf %237, %247 : vector<8x32xf32>
    %249 = arith.addf %246, %248 : vector<8x32xf32>
    %250 = math.tanh %249 : vector<8x32xf32>
    %cst_54 = arith.constant 1.000000e+00 : f32
    %251 = vector.broadcast %cst_54 : f32 to vector<8x32xf32>
    %252 = arith.subf %251, %245 : vector<8x32xf32>
    %253 = arith.mulf %252, %250 : vector<8x32xf32>
    %254 = arith.mulf %245, %196 : vector<8x32xf32>
    %255 = arith.addf %253, %254 : vector<8x32xf32>
    %256 = vector.extract_strided_slice %5 {offsets = [32, 0], sizes = [8, 96], strides = [1, 1]} : vector<64x96xf32> to vector<8x96xf32>
    %cst_55 = arith.constant dense<0.000000e+00> : vector<8x96xf32>
    %257 = tpu.matmul %225, %6, %cst_55 {dimension_numbers = #tpu.dot_dimension_numbers<[1], [0], [0], [1], [0, 0, 1, 1], [], []>} : vector<8x32xf32>, vector<32x96xf32>, vector<8x96xf32> -> vector<8x96xf32>
    %258 = arith.addf %257, %11 : vector<8x96xf32>
    %259 = vector.extract_strided_slice %256 {offsets = [0, 0], sizes = [8, 32], strides = [1, 1]} : vector<8x96xf32> to vector<8x32xf32>
    %260 = vector.extract_strided_slice %258 {offsets = [0, 0], sizes = [8, 32], strides = [1, 1]} : vector<8x96xf32> to vector<8x32xf32>
    %261 = arith.addf %259, %260 : vector<8x32xf32>
    %262 = arith.negf %261 : vector<8x32xf32>
    %263 = math.exp %262 : vector<8x32xf32>
    %cst_56 = arith.constant 1.000000e+00 : f32
    %264 = vector.broadcast %cst_56 : f32 to vector<8x32xf32>
    %265 = arith.addf %264, %263 : vector<8x32xf32>
    %266 = arith.divf %264, %265 : vector<8x32xf32>
    %267 = vector.extract_strided_slice %256 {offsets = [0, 32], sizes = [8, 32], strides = [1, 1]} : vector<8x96xf32> to vector<8x32xf32>
    %268 = vector.extract_strided_slice %258 {offsets = [0, 32], sizes = [8, 32], strides = [1, 1]} : vector<8x96xf32> to vector<8x32xf32>
    %269 = arith.addf %267, %268 : vector<8x32xf32>
    %270 = arith.negf %269 : vector<8x32xf32>
    %271 = math.exp %270 : vector<8x32xf32>
    %cst_57 = arith.constant 1.000000e+00 : f32
    %272 = vector.broadcast %cst_57 : f32 to vector<8x32xf32>
    %273 = arith.addf %272, %271 : vector<8x32xf32>
    %274 = arith.divf %272, %273 : vector<8x32xf32>
    %275 = vector.extract_strided_slice %256 {offsets = [0, 64], sizes = [8, 32], strides = [1, 1]} : vector<8x96xf32> to vector<8x32xf32>
    %276 = vector.extract_strided_slice %258 {offsets = [0, 64], sizes = [8, 32], strides = [1, 1]} : vector<8x96xf32> to vector<8x32xf32>
    %277 = arith.mulf %266, %276 : vector<8x32xf32>
    %278 = arith.addf %275, %277 : vector<8x32xf32>
    %279 = math.tanh %278 : vector<8x32xf32>
    %cst_58 = arith.constant 1.000000e+00 : f32
    %280 = vector.broadcast %cst_58 : f32 to vector<8x32xf32>
    %281 = arith.subf %280, %274 : vector<8x32xf32>
    %282 = arith.mulf %281, %279 : vector<8x32xf32>
    %283 = arith.mulf %274, %225 : vector<8x32xf32>
    %284 = arith.addf %282, %283 : vector<8x32xf32>
    %cst_59 = arith.constant dense<0.000000e+00> : vector<8x96xf32>
    %285 = tpu.matmul %284, %7, %cst_59 {dimension_numbers = #tpu.dot_dimension_numbers<[1], [0], [0], [1], [0, 0, 1, 1], [], []>} : vector<8x32xf32>, vector<32x96xf32>, vector<8x96xf32> -> vector<8x96xf32>
    %286 = arith.addf %285, %14 : vector<8x96xf32>
    %cst_60 = arith.constant dense<0.000000e+00> : vector<8x96xf32>
    %287 = tpu.matmul %255, %8, %cst_60 {dimension_numbers = #tpu.dot_dimension_numbers<[1], [0], [0], [1], [0, 0, 1, 1], [], []>} : vector<8x32xf32>, vector<32x96xf32>, vector<8x96xf32> -> vector<8x96xf32>
    %288 = arith.addf %287, %17 : vector<8x96xf32>
    %289 = vector.extract_strided_slice %286 {offsets = [0, 0], sizes = [8, 32], strides = [1, 1]} : vector<8x96xf32> to vector<8x32xf32>
    %290 = vector.extract_strided_slice %288 {offsets = [0, 0], sizes = [8, 32], strides = [1, 1]} : vector<8x96xf32> to vector<8x32xf32>
    %291 = arith.addf %289, %290 : vector<8x32xf32>
    %292 = arith.negf %291 : vector<8x32xf32>
    %293 = math.exp %292 : vector<8x32xf32>
    %cst_61 = arith.constant 1.000000e+00 : f32
    %294 = vector.broadcast %cst_61 : f32 to vector<8x32xf32>
    %295 = arith.addf %294, %293 : vector<8x32xf32>
    %296 = arith.divf %294, %295 : vector<8x32xf32>
    %297 = vector.extract_strided_slice %286 {offsets = [0, 32], sizes = [8, 32], strides = [1, 1]} : vector<8x96xf32> to vector<8x32xf32>
    %298 = vector.extract_strided_slice %288 {offsets = [0, 32], sizes = [8, 32], strides = [1, 1]} : vector<8x96xf32> to vector<8x32xf32>
    %299 = arith.addf %297, %298 : vector<8x32xf32>
    %300 = arith.negf %299 : vector<8x32xf32>
    %301 = math.exp %300 : vector<8x32xf32>
    %cst_62 = arith.constant 1.000000e+00 : f32
    %302 = vector.broadcast %cst_62 : f32 to vector<8x32xf32>
    %303 = arith.addf %302, %301 : vector<8x32xf32>
    %304 = arith.divf %302, %303 : vector<8x32xf32>
    %305 = vector.extract_strided_slice %286 {offsets = [0, 64], sizes = [8, 32], strides = [1, 1]} : vector<8x96xf32> to vector<8x32xf32>
    %306 = vector.extract_strided_slice %288 {offsets = [0, 64], sizes = [8, 32], strides = [1, 1]} : vector<8x96xf32> to vector<8x32xf32>
    %307 = arith.mulf %296, %306 : vector<8x32xf32>
    %308 = arith.addf %305, %307 : vector<8x32xf32>
    %309 = math.tanh %308 : vector<8x32xf32>
    %cst_63 = arith.constant 1.000000e+00 : f32
    %310 = vector.broadcast %cst_63 : f32 to vector<8x32xf32>
    %311 = arith.subf %310, %304 : vector<8x32xf32>
    %312 = arith.mulf %311, %309 : vector<8x32xf32>
    %313 = arith.mulf %304, %255 : vector<8x32xf32>
    %314 = arith.addf %312, %313 : vector<8x32xf32>
    %315 = vector.extract_strided_slice %5 {offsets = [40, 0], sizes = [8, 96], strides = [1, 1]} : vector<64x96xf32> to vector<8x96xf32>
    %cst_64 = arith.constant dense<0.000000e+00> : vector<8x96xf32>
    %316 = tpu.matmul %284, %6, %cst_64 {dimension_numbers = #tpu.dot_dimension_numbers<[1], [0], [0], [1], [0, 0, 1, 1], [], []>} : vector<8x32xf32>, vector<32x96xf32>, vector<8x96xf32> -> vector<8x96xf32>
    %317 = arith.addf %316, %11 : vector<8x96xf32>
    %318 = vector.extract_strided_slice %315 {offsets = [0, 0], sizes = [8, 32], strides = [1, 1]} : vector<8x96xf32> to vector<8x32xf32>
    %319 = vector.extract_strided_slice %317 {offsets = [0, 0], sizes = [8, 32], strides = [1, 1]} : vector<8x96xf32> to vector<8x32xf32>
    %320 = arith.addf %318, %319 : vector<8x32xf32>
    %321 = arith.negf %320 : vector<8x32xf32>
    %322 = math.exp %321 : vector<8x32xf32>
    %cst_65 = arith.constant 1.000000e+00 : f32
    %323 = vector.broadcast %cst_65 : f32 to vector<8x32xf32>
    %324 = arith.addf %323, %322 : vector<8x32xf32>
    %325 = arith.divf %323, %324 : vector<8x32xf32>
    %326 = vector.extract_strided_slice %315 {offsets = [0, 32], sizes = [8, 32], strides = [1, 1]} : vector<8x96xf32> to vector<8x32xf32>
    %327 = vector.extract_strided_slice %317 {offsets = [0, 32], sizes = [8, 32], strides = [1, 1]} : vector<8x96xf32> to vector<8x32xf32>
    %328 = arith.addf %326, %327 : vector<8x32xf32>
    %329 = arith.negf %328 : vector<8x32xf32>
    %330 = math.exp %329 : vector<8x32xf32>
    %cst_66 = arith.constant 1.000000e+00 : f32
    %331 = vector.broadcast %cst_66 : f32 to vector<8x32xf32>
    %332 = arith.addf %331, %330 : vector<8x32xf32>
    %333 = arith.divf %331, %332 : vector<8x32xf32>
    %334 = vector.extract_strided_slice %315 {offsets = [0, 64], sizes = [8, 32], strides = [1, 1]} : vector<8x96xf32> to vector<8x32xf32>
    %335 = vector.extract_strided_slice %317 {offsets = [0, 64], sizes = [8, 32], strides = [1, 1]} : vector<8x96xf32> to vector<8x32xf32>
    %336 = arith.mulf %325, %335 : vector<8x32xf32>
    %337 = arith.addf %334, %336 : vector<8x32xf32>
    %338 = math.tanh %337 : vector<8x32xf32>
    %cst_67 = arith.constant 1.000000e+00 : f32
    %339 = vector.broadcast %cst_67 : f32 to vector<8x32xf32>
    %340 = arith.subf %339, %333 : vector<8x32xf32>
    %341 = arith.mulf %340, %338 : vector<8x32xf32>
    %342 = arith.mulf %333, %284 : vector<8x32xf32>
    %343 = arith.addf %341, %342 : vector<8x32xf32>
    %cst_68 = arith.constant dense<0.000000e+00> : vector<8x96xf32>
    %344 = tpu.matmul %343, %7, %cst_68 {dimension_numbers = #tpu.dot_dimension_numbers<[1], [0], [0], [1], [0, 0, 1, 1], [], []>} : vector<8x32xf32>, vector<32x96xf32>, vector<8x96xf32> -> vector<8x96xf32>
    %345 = arith.addf %344, %14 : vector<8x96xf32>
    %cst_69 = arith.constant dense<0.000000e+00> : vector<8x96xf32>
    %346 = tpu.matmul %314, %8, %cst_69 {dimension_numbers = #tpu.dot_dimension_numbers<[1], [0], [0], [1], [0, 0, 1, 1], [], []>} : vector<8x32xf32>, vector<32x96xf32>, vector<8x96xf32> -> vector<8x96xf32>
    %347 = arith.addf %346, %17 : vector<8x96xf32>
    %348 = vector.extract_strided_slice %345 {offsets = [0, 0], sizes = [8, 32], strides = [1, 1]} : vector<8x96xf32> to vector<8x32xf32>
    %349 = vector.extract_strided_slice %347 {offsets = [0, 0], sizes = [8, 32], strides = [1, 1]} : vector<8x96xf32> to vector<8x32xf32>
    %350 = arith.addf %348, %349 : vector<8x32xf32>
    %351 = arith.negf %350 : vector<8x32xf32>
    %352 = math.exp %351 : vector<8x32xf32>
    %cst_70 = arith.constant 1.000000e+00 : f32
    %353 = vector.broadcast %cst_70 : f32 to vector<8x32xf32>
    %354 = arith.addf %353, %352 : vector<8x32xf32>
    %355 = arith.divf %353, %354 : vector<8x32xf32>
    %356 = vector.extract_strided_slice %345 {offsets = [0, 32], sizes = [8, 32], strides = [1, 1]} : vector<8x96xf32> to vector<8x32xf32>
    %357 = vector.extract_strided_slice %347 {offsets = [0, 32], sizes = [8, 32], strides = [1, 1]} : vector<8x96xf32> to vector<8x32xf32>
    %358 = arith.addf %356, %357 : vector<8x32xf32>
    %359 = arith.negf %358 : vector<8x32xf32>
    %360 = math.exp %359 : vector<8x32xf32>
    %cst_71 = arith.constant 1.000000e+00 : f32
    %361 = vector.broadcast %cst_71 : f32 to vector<8x32xf32>
    %362 = arith.addf %361, %360 : vector<8x32xf32>
    %363 = arith.divf %361, %362 : vector<8x32xf32>
    %364 = vector.extract_strided_slice %345 {offsets = [0, 64], sizes = [8, 32], strides = [1, 1]} : vector<8x96xf32> to vector<8x32xf32>
    %365 = vector.extract_strided_slice %347 {offsets = [0, 64], sizes = [8, 32], strides = [1, 1]} : vector<8x96xf32> to vector<8x32xf32>
    %366 = arith.mulf %355, %365 : vector<8x32xf32>
    %367 = arith.addf %364, %366 : vector<8x32xf32>
    %368 = math.tanh %367 : vector<8x32xf32>
    %cst_72 = arith.constant 1.000000e+00 : f32
    %369 = vector.broadcast %cst_72 : f32 to vector<8x32xf32>
    %370 = arith.subf %369, %363 : vector<8x32xf32>
    %371 = arith.mulf %370, %368 : vector<8x32xf32>
    %372 = arith.mulf %363, %314 : vector<8x32xf32>
    %373 = arith.addf %371, %372 : vector<8x32xf32>
    %374 = vector.extract_strided_slice %5 {offsets = [48, 0], sizes = [8, 96], strides = [1, 1]} : vector<64x96xf32> to vector<8x96xf32>
    %cst_73 = arith.constant dense<0.000000e+00> : vector<8x96xf32>
    %375 = tpu.matmul %343, %6, %cst_73 {dimension_numbers = #tpu.dot_dimension_numbers<[1], [0], [0], [1], [0, 0, 1, 1], [], []>} : vector<8x32xf32>, vector<32x96xf32>, vector<8x96xf32> -> vector<8x96xf32>
    %376 = arith.addf %375, %11 : vector<8x96xf32>
    %377 = vector.extract_strided_slice %374 {offsets = [0, 0], sizes = [8, 32], strides = [1, 1]} : vector<8x96xf32> to vector<8x32xf32>
    %378 = vector.extract_strided_slice %376 {offsets = [0, 0], sizes = [8, 32], strides = [1, 1]} : vector<8x96xf32> to vector<8x32xf32>
    %379 = arith.addf %377, %378 : vector<8x32xf32>
    %380 = arith.negf %379 : vector<8x32xf32>
    %381 = math.exp %380 : vector<8x32xf32>
    %cst_74 = arith.constant 1.000000e+00 : f32
    %382 = vector.broadcast %cst_74 : f32 to vector<8x32xf32>
    %383 = arith.addf %382, %381 : vector<8x32xf32>
    %384 = arith.divf %382, %383 : vector<8x32xf32>
    %385 = vector.extract_strided_slice %374 {offsets = [0, 32], sizes = [8, 32], strides = [1, 1]} : vector<8x96xf32> to vector<8x32xf32>
    %386 = vector.extract_strided_slice %376 {offsets = [0, 32], sizes = [8, 32], strides = [1, 1]} : vector<8x96xf32> to vector<8x32xf32>
    %387 = arith.addf %385, %386 : vector<8x32xf32>
    %388 = arith.negf %387 : vector<8x32xf32>
    %389 = math.exp %388 : vector<8x32xf32>
    %cst_75 = arith.constant 1.000000e+00 : f32
    %390 = vector.broadcast %cst_75 : f32 to vector<8x32xf32>
    %391 = arith.addf %390, %389 : vector<8x32xf32>
    %392 = arith.divf %390, %391 : vector<8x32xf32>
    %393 = vector.extract_strided_slice %374 {offsets = [0, 64], sizes = [8, 32], strides = [1, 1]} : vector<8x96xf32> to vector<8x32xf32>
    %394 = vector.extract_strided_slice %376 {offsets = [0, 64], sizes = [8, 32], strides = [1, 1]} : vector<8x96xf32> to vector<8x32xf32>
    %395 = arith.mulf %384, %394 : vector<8x32xf32>
    %396 = arith.addf %393, %395 : vector<8x32xf32>
    %397 = math.tanh %396 : vector<8x32xf32>
    %cst_76 = arith.constant 1.000000e+00 : f32
    %398 = vector.broadcast %cst_76 : f32 to vector<8x32xf32>
    %399 = arith.subf %398, %392 : vector<8x32xf32>
    %400 = arith.mulf %399, %397 : vector<8x32xf32>
    %401 = arith.mulf %392, %343 : vector<8x32xf32>
    %402 = arith.addf %400, %401 : vector<8x32xf32>
    %cst_77 = arith.constant dense<0.000000e+00> : vector<8x96xf32>
    %403 = tpu.matmul %402, %7, %cst_77 {dimension_numbers = #tpu.dot_dimension_numbers<[1], [0], [0], [1], [0, 0, 1, 1], [], []>} : vector<8x32xf32>, vector<32x96xf32>, vector<8x96xf32> -> vector<8x96xf32>
    %404 = arith.addf %403, %14 : vector<8x96xf32>
    %cst_78 = arith.constant dense<0.000000e+00> : vector<8x96xf32>
    %405 = tpu.matmul %373, %8, %cst_78 {dimension_numbers = #tpu.dot_dimension_numbers<[1], [0], [0], [1], [0, 0, 1, 1], [], []>} : vector<8x32xf32>, vector<32x96xf32>, vector<8x96xf32> -> vector<8x96xf32>
    %406 = arith.addf %405, %17 : vector<8x96xf32>
    %407 = vector.extract_strided_slice %404 {offsets = [0, 0], sizes = [8, 32], strides = [1, 1]} : vector<8x96xf32> to vector<8x32xf32>
    %408 = vector.extract_strided_slice %406 {offsets = [0, 0], sizes = [8, 32], strides = [1, 1]} : vector<8x96xf32> to vector<8x32xf32>
    %409 = arith.addf %407, %408 : vector<8x32xf32>
    %410 = arith.negf %409 : vector<8x32xf32>
    %411 = math.exp %410 : vector<8x32xf32>
    %cst_79 = arith.constant 1.000000e+00 : f32
    %412 = vector.broadcast %cst_79 : f32 to vector<8x32xf32>
    %413 = arith.addf %412, %411 : vector<8x32xf32>
    %414 = arith.divf %412, %413 : vector<8x32xf32>
    %415 = vector.extract_strided_slice %404 {offsets = [0, 32], sizes = [8, 32], strides = [1, 1]} : vector<8x96xf32> to vector<8x32xf32>
    %416 = vector.extract_strided_slice %406 {offsets = [0, 32], sizes = [8, 32], strides = [1, 1]} : vector<8x96xf32> to vector<8x32xf32>
    %417 = arith.addf %415, %416 : vector<8x32xf32>
    %418 = arith.negf %417 : vector<8x32xf32>
    %419 = math.exp %418 : vector<8x32xf32>
    %cst_80 = arith.constant 1.000000e+00 : f32
    %420 = vector.broadcast %cst_80 : f32 to vector<8x32xf32>
    %421 = arith.addf %420, %419 : vector<8x32xf32>
    %422 = arith.divf %420, %421 : vector<8x32xf32>
    %423 = vector.extract_strided_slice %404 {offsets = [0, 64], sizes = [8, 32], strides = [1, 1]} : vector<8x96xf32> to vector<8x32xf32>
    %424 = vector.extract_strided_slice %406 {offsets = [0, 64], sizes = [8, 32], strides = [1, 1]} : vector<8x96xf32> to vector<8x32xf32>
    %425 = arith.mulf %414, %424 : vector<8x32xf32>
    %426 = arith.addf %423, %425 : vector<8x32xf32>
    %427 = math.tanh %426 : vector<8x32xf32>
    %cst_81 = arith.constant 1.000000e+00 : f32
    %428 = vector.broadcast %cst_81 : f32 to vector<8x32xf32>
    %429 = arith.subf %428, %422 : vector<8x32xf32>
    %430 = arith.mulf %429, %427 : vector<8x32xf32>
    %431 = arith.mulf %422, %373 : vector<8x32xf32>
    %432 = arith.addf %430, %431 : vector<8x32xf32>
    %433 = vector.extract_strided_slice %5 {offsets = [56, 0], sizes = [8, 96], strides = [1, 1]} : vector<64x96xf32> to vector<8x96xf32>
    %cst_82 = arith.constant dense<0.000000e+00> : vector<8x96xf32>
    %434 = tpu.matmul %402, %6, %cst_82 {dimension_numbers = #tpu.dot_dimension_numbers<[1], [0], [0], [1], [0, 0, 1, 1], [], []>} : vector<8x32xf32>, vector<32x96xf32>, vector<8x96xf32> -> vector<8x96xf32>
    %435 = arith.addf %434, %11 : vector<8x96xf32>
    %436 = vector.extract_strided_slice %433 {offsets = [0, 0], sizes = [8, 32], strides = [1, 1]} : vector<8x96xf32> to vector<8x32xf32>
    %437 = vector.extract_strided_slice %435 {offsets = [0, 0], sizes = [8, 32], strides = [1, 1]} : vector<8x96xf32> to vector<8x32xf32>
    %438 = arith.addf %436, %437 : vector<8x32xf32>
    %439 = arith.negf %438 : vector<8x32xf32>
    %440 = math.exp %439 : vector<8x32xf32>
    %cst_83 = arith.constant 1.000000e+00 : f32
    %441 = vector.broadcast %cst_83 : f32 to vector<8x32xf32>
    %442 = arith.addf %441, %440 : vector<8x32xf32>
    %443 = arith.divf %441, %442 : vector<8x32xf32>
    %444 = vector.extract_strided_slice %433 {offsets = [0, 32], sizes = [8, 32], strides = [1, 1]} : vector<8x96xf32> to vector<8x32xf32>
    %445 = vector.extract_strided_slice %435 {offsets = [0, 32], sizes = [8, 32], strides = [1, 1]} : vector<8x96xf32> to vector<8x32xf32>
    %446 = arith.addf %444, %445 : vector<8x32xf32>
    %447 = arith.negf %446 : vector<8x32xf32>
    %448 = math.exp %447 : vector<8x32xf32>
    %cst_84 = arith.constant 1.000000e+00 : f32
    %449 = vector.broadcast %cst_84 : f32 to vector<8x32xf32>
    %450 = arith.addf %449, %448 : vector<8x32xf32>
    %451 = arith.divf %449, %450 : vector<8x32xf32>
    %452 = vector.extract_strided_slice %433 {offsets = [0, 64], sizes = [8, 32], strides = [1, 1]} : vector<8x96xf32> to vector<8x32xf32>
    %453 = vector.extract_strided_slice %435 {offsets = [0, 64], sizes = [8, 32], strides = [1, 1]} : vector<8x96xf32> to vector<8x32xf32>
    %454 = arith.mulf %443, %453 : vector<8x32xf32>
    %455 = arith.addf %452, %454 : vector<8x32xf32>
    %456 = math.tanh %455 : vector<8x32xf32>
    %cst_85 = arith.constant 1.000000e+00 : f32
    %457 = vector.broadcast %cst_85 : f32 to vector<8x32xf32>
    %458 = arith.subf %457, %451 : vector<8x32xf32>
    %459 = arith.mulf %458, %456 : vector<8x32xf32>
    %460 = arith.mulf %451, %402 : vector<8x32xf32>
    %461 = arith.addf %459, %460 : vector<8x32xf32>
    %cst_86 = arith.constant dense<0.000000e+00> : vector<8x96xf32>
    %462 = tpu.matmul %461, %7, %cst_86 {dimension_numbers = #tpu.dot_dimension_numbers<[1], [0], [0], [1], [0, 0, 1, 1], [], []>} : vector<8x32xf32>, vector<32x96xf32>, vector<8x96xf32> -> vector<8x96xf32>
    %463 = arith.addf %462, %14 : vector<8x96xf32>
    %cst_87 = arith.constant dense<0.000000e+00> : vector<8x96xf32>
    %464 = tpu.matmul %432, %8, %cst_87 {dimension_numbers = #tpu.dot_dimension_numbers<[1], [0], [0], [1], [0, 0, 1, 1], [], []>} : vector<8x32xf32>, vector<32x96xf32>, vector<8x96xf32> -> vector<8x96xf32>
    %465 = arith.addf %464, %17 : vector<8x96xf32>
    %466 = vector.extract_strided_slice %463 {offsets = [0, 0], sizes = [8, 32], strides = [1, 1]} : vector<8x96xf32> to vector<8x32xf32>
    %467 = vector.extract_strided_slice %465 {offsets = [0, 0], sizes = [8, 32], strides = [1, 1]} : vector<8x96xf32> to vector<8x32xf32>
    %468 = arith.addf %466, %467 : vector<8x32xf32>
    %469 = arith.negf %468 : vector<8x32xf32>
    %470 = math.exp %469 : vector<8x32xf32>
    %cst_88 = arith.constant 1.000000e+00 : f32
    %471 = vector.broadcast %cst_88 : f32 to vector<8x32xf32>
    %472 = arith.addf %471, %470 : vector<8x32xf32>
    %473 = arith.divf %471, %472 : vector<8x32xf32>
    %474 = vector.extract_strided_slice %463 {offsets = [0, 32], sizes = [8, 32], strides = [1, 1]} : vector<8x96xf32> to vector<8x32xf32>
    %475 = vector.extract_strided_slice %465 {offsets = [0, 32], sizes = [8, 32], strides = [1, 1]} : vector<8x96xf32> to vector<8x32xf32>
    %476 = arith.addf %474, %475 : vector<8x32xf32>
    %477 = arith.negf %476 : vector<8x32xf32>
    %478 = math.exp %477 : vector<8x32xf32>
    %cst_89 = arith.constant 1.000000e+00 : f32
    %479 = vector.broadcast %cst_89 : f32 to vector<8x32xf32>
    %480 = arith.addf %479, %478 : vector<8x32xf32>
    %481 = arith.divf %479, %480 : vector<8x32xf32>
    %482 = vector.extract_strided_slice %463 {offsets = [0, 64], sizes = [8, 32], strides = [1, 1]} : vector<8x96xf32> to vector<8x32xf32>
    %483 = vector.extract_strided_slice %465 {offsets = [0, 64], sizes = [8, 32], strides = [1, 1]} : vector<8x96xf32> to vector<8x32xf32>
    %484 = arith.mulf %473, %483 : vector<8x32xf32>
    %485 = arith.addf %482, %484 : vector<8x32xf32>
    %486 = math.tanh %485 : vector<8x32xf32>
    %cst_90 = arith.constant 1.000000e+00 : f32
    %487 = vector.broadcast %cst_90 : f32 to vector<8x32xf32>
    %488 = arith.subf %487, %481 : vector<8x32xf32>
    %489 = arith.mulf %488, %486 : vector<8x32xf32>
    %490 = arith.mulf %481, %432 : vector<8x32xf32>
    %491 = arith.addf %489, %490 : vector<8x32xf32>
    %c0_91 = arith.constant 0 : index
    %c0_92 = arith.constant 0 : index
    %492 = vector.load %arg10[%c0_91, %c0_92] : memref<32x3xf32, #tpu.memory_space<vmem>>, vector<32x3xf32>
    %cst_93 = arith.constant dense<0.000000e+00> : vector<8x3xf32>
    %493 = tpu.matmul %491, %492, %cst_93 {dimension_numbers = #tpu.dot_dimension_numbers<[1], [0], [0], [1], [0, 0, 1, 1], [], []>} : vector<8x32xf32>, vector<32x3xf32>, vector<8x3xf32> -> vector<8x3xf32>
    %494 = vector.extract_strided_slice %493 {offsets = [0, 0], sizes = [8, 1], strides = [1, 1]} : vector<8x3xf32> to vector<8x1xf32>
    %495 = vector.extract_strided_slice %493 {offsets = [0, 1], sizes = [8, 1], strides = [1, 1]} : vector<8x3xf32> to vector<8x1xf32>
    %496 = vector.extract_strided_slice %493 {offsets = [0, 2], sizes = [8, 1], strides = [1, 1]} : vector<8x3xf32> to vector<8x1xf32>
    %cst_94 = arith.constant 0.000000e+00 : f32
    %497 = vector.broadcast %cst_94 : f32 to vector<8x8xf32>
    %cst_95 = arith.constant 0.000000e+00 : f32
    %498 = vector.broadcast %cst_95 : f32 to vector<8x8xf32>
    %c0_96 = arith.constant 0 : index
    %c0_97 = arith.constant 0 : index
    %c0_98 = arith.constant 0 : index
    %499 = vector.load %arg9[%c0_96, %c0_97, %c0_98] : memref<8x8x8xf32, #tpu.memory_space<vmem>>, vector<1x8x8xf32>
    %500 = vector.shape_cast %499 : vector<1x8x8xf32> to vector<8x8xf32>
    %c0_99 = arith.constant 0 : index
    %c0_100 = arith.constant 0 : index
    %501 = memref.load %arg12[%c0_99, %c0_100] : memref<1x10xf32, #tpu.memory_space<smem>>
    %502 = vector.broadcast %501 : f32 to vector<8x8xf32>
    %503 = arith.mulf %500, %502 : vector<8x8xf32>
    %504 = arith.addf %497, %503 : vector<8x8xf32>
    %505 = arith.addf %498, %500 : vector<8x8xf32>
    %c1 = arith.constant 1 : index
    %c0_101 = arith.constant 0 : index
    %c0_102 = arith.constant 0 : index
    %506 = vector.load %arg9[%c1, %c0_101, %c0_102] : memref<8x8x8xf32, #tpu.memory_space<vmem>>, vector<1x8x8xf32>
    %507 = vector.shape_cast %506 : vector<1x8x8xf32> to vector<8x8xf32>
    %c0_103 = arith.constant 0 : index
    %c1_104 = arith.constant 1 : index
    %508 = memref.load %arg12[%c0_103, %c1_104] : memref<1x10xf32, #tpu.memory_space<smem>>
    %509 = vector.broadcast %508 : f32 to vector<8x8xf32>
    %510 = arith.mulf %507, %509 : vector<8x8xf32>
    %511 = arith.addf %504, %510 : vector<8x8xf32>
    %512 = arith.addf %505, %507 : vector<8x8xf32>
    %c2 = arith.constant 2 : index
    %c0_105 = arith.constant 0 : index
    %c0_106 = arith.constant 0 : index
    %513 = vector.load %arg9[%c2, %c0_105, %c0_106] : memref<8x8x8xf32, #tpu.memory_space<vmem>>, vector<1x8x8xf32>
    %514 = vector.shape_cast %513 : vector<1x8x8xf32> to vector<8x8xf32>
    %c0_107 = arith.constant 0 : index
    %c2_108 = arith.constant 2 : index
    %515 = memref.load %arg12[%c0_107, %c2_108] : memref<1x10xf32, #tpu.memory_space<smem>>
    %516 = vector.broadcast %515 : f32 to vector<8x8xf32>
    %517 = arith.mulf %514, %516 : vector<8x8xf32>
    %518 = arith.addf %511, %517 : vector<8x8xf32>
    %519 = arith.addf %512, %514 : vector<8x8xf32>
    %c3 = arith.constant 3 : index
    %c0_109 = arith.constant 0 : index
    %c0_110 = arith.constant 0 : index
    %520 = vector.load %arg9[%c3, %c0_109, %c0_110] : memref<8x8x8xf32, #tpu.memory_space<vmem>>, vector<1x8x8xf32>
    %521 = vector.shape_cast %520 : vector<1x8x8xf32> to vector<8x8xf32>
    %c0_111 = arith.constant 0 : index
    %c3_112 = arith.constant 3 : index
    %522 = memref.load %arg12[%c0_111, %c3_112] : memref<1x10xf32, #tpu.memory_space<smem>>
    %523 = vector.broadcast %522 : f32 to vector<8x8xf32>
    %524 = arith.mulf %521, %523 : vector<8x8xf32>
    %525 = arith.addf %518, %524 : vector<8x8xf32>
    %526 = arith.addf %519, %521 : vector<8x8xf32>
    %c4 = arith.constant 4 : index
    %c0_113 = arith.constant 0 : index
    %c0_114 = arith.constant 0 : index
    %527 = vector.load %arg9[%c4, %c0_113, %c0_114] : memref<8x8x8xf32, #tpu.memory_space<vmem>>, vector<1x8x8xf32>
    %528 = vector.shape_cast %527 : vector<1x8x8xf32> to vector<8x8xf32>
    %c0_115 = arith.constant 0 : index
    %c4_116 = arith.constant 4 : index
    %529 = memref.load %arg12[%c0_115, %c4_116] : memref<1x10xf32, #tpu.memory_space<smem>>
    %530 = vector.broadcast %529 : f32 to vector<8x8xf32>
    %531 = arith.mulf %528, %530 : vector<8x8xf32>
    %532 = arith.addf %525, %531 : vector<8x8xf32>
    %533 = arith.addf %526, %528 : vector<8x8xf32>
    %c5 = arith.constant 5 : index
    %c0_117 = arith.constant 0 : index
    %c0_118 = arith.constant 0 : index
    %534 = vector.load %arg9[%c5, %c0_117, %c0_118] : memref<8x8x8xf32, #tpu.memory_space<vmem>>, vector<1x8x8xf32>
    %535 = vector.shape_cast %534 : vector<1x8x8xf32> to vector<8x8xf32>
    %c0_119 = arith.constant 0 : index
    %c5_120 = arith.constant 5 : index
    %536 = memref.load %arg12[%c0_119, %c5_120] : memref<1x10xf32, #tpu.memory_space<smem>>
    %537 = vector.broadcast %536 : f32 to vector<8x8xf32>
    %538 = arith.mulf %535, %537 : vector<8x8xf32>
    %539 = arith.addf %532, %538 : vector<8x8xf32>
    %540 = arith.addf %533, %535 : vector<8x8xf32>
    %c6 = arith.constant 6 : index
    %c0_121 = arith.constant 0 : index
    %c0_122 = arith.constant 0 : index
    %541 = vector.load %arg9[%c6, %c0_121, %c0_122] : memref<8x8x8xf32, #tpu.memory_space<vmem>>, vector<1x8x8xf32>
    %542 = vector.shape_cast %541 : vector<1x8x8xf32> to vector<8x8xf32>
    %c0_123 = arith.constant 0 : index
    %c6_124 = arith.constant 6 : index
    %543 = memref.load %arg12[%c0_123, %c6_124] : memref<1x10xf32, #tpu.memory_space<smem>>
    %544 = vector.broadcast %543 : f32 to vector<8x8xf32>
    %545 = arith.mulf %542, %544 : vector<8x8xf32>
    %546 = arith.addf %539, %545 : vector<8x8xf32>
    %547 = arith.addf %540, %542 : vector<8x8xf32>
    %c7 = arith.constant 7 : index
    %c0_125 = arith.constant 0 : index
    %c0_126 = arith.constant 0 : index
    %548 = vector.load %arg9[%c7, %c0_125, %c0_126] : memref<8x8x8xf32, #tpu.memory_space<vmem>>, vector<1x8x8xf32>
    %549 = vector.shape_cast %548 : vector<1x8x8xf32> to vector<8x8xf32>
    %c0_127 = arith.constant 0 : index
    %c7_128 = arith.constant 7 : index
    %550 = memref.load %arg12[%c0_127, %c7_128] : memref<1x10xf32, #tpu.memory_space<smem>>
    %551 = vector.broadcast %550 : f32 to vector<8x8xf32>
    %552 = arith.mulf %549, %551 : vector<8x8xf32>
    %553 = arith.addf %546, %552 : vector<8x8xf32>
    %554 = arith.addf %547, %549 : vector<8x8xf32>
    %555 = tpu.transpose %495, [1, 0] : vector<8x1xf32> -> vector<1x8xf32>
    %556 = vector.broadcast %494 : vector<8x1xf32> to vector<8x8xf32>
    %557 = vector.broadcast %555 : vector<1x8xf32> to vector<8x8xf32>
    %558 = arith.addf %556, %557 : vector<8x8xf32>
    %559 = arith.addf %558, %553 : vector<8x8xf32>
    %c0_129 = arith.constant 0 : index
    %c8 = arith.constant 8 : index
    %560 = memref.load %arg12[%c0_129, %c8] : memref<1x10xf32, #tpu.memory_space<smem>>
    %561 = vector.broadcast %560 : f32 to vector<8x8xf32>
    %562 = arith.addf %559, %561 : vector<8x8xf32>
    %cst_130 = arith.constant 0.000000e+00 : f32
    %563 = vector.broadcast %cst_130 : f32 to vector<8x8xf32>
    %564 = arith.cmpf oge, %562, %563 : vector<8x8xf32>
    %cst_131 = arith.constant 0.00999999977 : f32
    %565 = vector.broadcast %cst_131 : f32 to vector<8x8xf32>
    %566 = arith.mulf %565, %562 : vector<8x8xf32>
    %567 = arith.select %564, %562, %566 : vector<8x8xi1>, vector<8x8xf32>
    %cst_132 = arith.constant 0.000000e+00 : f32
    %568 = vector.broadcast %cst_132 : f32 to vector<8x8xf32>
    %569 = arith.cmpf one, %554, %568 : vector<8x8xf32>
    %cst_133 = arith.constant 1.000000e+00 : f32
    %cst_134 = arith.constant 0.000000e+00 : f32
    %570 = vector.broadcast %cst_133 : f32 to vector<8x8xf32>
    %571 = vector.broadcast %cst_134 : f32 to vector<8x8xf32>
    %572 = arith.select %569, %570, %571 : vector<8x8xi1>, vector<8x8xf32>
    %573 = arith.mulf %572, %567 : vector<8x8xf32>
    %cst_135 = arith.constant 0.000000e+00 : f32
    %574 = vector.broadcast %cst_135 : f32 to vector<8x8xf32>
    %575 = arith.cmpf oeq, %573, %574 : vector<8x8xf32>
    %cst_136 = arith.constant -1.000000e+04 : f32
    %576 = vector.broadcast %cst_136 : f32 to vector<8x8xf32>
    %577 = arith.select %575, %576, %573 : vector<8x8xi1>, vector<8x8xf32>
    %cst_137 = arith.constant dense<0xFF800000> : vector<8xf32>
    %578 = vector.multi_reduction <maximumf>, %577, %cst_137 [1] : vector<8x8xf32> to vector<8xf32>
    %579 = vector.shape_cast %578 : vector<8xf32> to vector<8x1xf32>
    %580 = vector.broadcast %579 : vector<8x1xf32> to vector<8x8xf32>
    %581 = arith.subf %577, %580 : vector<8x8xf32>
    %582 = math.exp %581 : vector<8x8xf32>
    %cst_138 = arith.constant dense<0.000000e+00> : vector<8xf32>
    %583 = vector.multi_reduction <add>, %582, %cst_138 [1] : vector<8x8xf32> to vector<8xf32>
    %584 = vector.shape_cast %583 : vector<8xf32> to vector<8x1xf32>
    %585 = tpu.reciprocal %584 {approx = true} : vector<8x1xf32> -> vector<8x1xf32>
    %586 = vector.broadcast %585 : vector<8x1xf32> to vector<8x8xf32>
    %587 = arith.mulf %582, %586 : vector<8x8xf32>
    %588 = arith.mulf %587, %572 : vector<8x8xf32>
    %cst_139 = arith.constant dense<0.000000e+00> : vector<8x32xf32>
    %589 = tpu.matmul %588, %491, %cst_139 {dimension_numbers = #tpu.dot_dimension_numbers<[1], [0], [0], [1], [0, 0, 1, 1], [], []>} : vector<8x8xf32>, vector<8x32xf32>, vector<8x32xf32> -> vector<8x32xf32>
    %c0_140 = arith.constant 0 : index
    %c0_141 = arith.constant 0 : index
    %590 = vector.load %arg11[%c0_140, %c0_141] : memref<32x1xf32, #tpu.memory_space<vmem>>, vector<32x1xf32>
    %cst_142 = arith.constant dense<0.000000e+00> : vector<8x1xf32>
    %591 = tpu.matmul %589, %590, %cst_142 {dimension_numbers = #tpu.dot_dimension_numbers<[1], [0], [0], [1], [0, 0, 1, 1], [], []>} : vector<8x32xf32>, vector<32x1xf32>, vector<8x1xf32> -> vector<8x1xf32>
    %592 = arith.addf %496, %591 : vector<8x1xf32>
    %c0_143 = arith.constant 0 : index
    %c9 = arith.constant 9 : index
    %593 = memref.load %arg12[%c0_143, %c9] : memref<1x10xf32, #tpu.memory_space<smem>>
    %594 = vector.broadcast %593 : f32 to vector<8x1xf32>
    %595 = arith.addf %592, %594 : vector<8x1xf32>
    %c0_144 = arith.constant 0 : index
    %c0_145 = arith.constant 0 : index
    %596 = vector.load %arg13[%c0_144, %c0_145] : memref<8x1xf32, #tpu.memory_space<vmem>>, vector<8x1xf32>
    tpu.vector_store %arg13[%c0_144, %c0_145], %595 {strides = array<i32>} : memref<8x1xf32, #tpu.memory_space<vmem>>, vector<8x1xf32>,
    return
  }
}

</mosaic_0001>

<bundles_post_ra>
// kernel: rsr_forward.1
= control target key start
LH: loop header
LB: loop body
LE: loop exit
PB: predicated region body
PF: predicated region fallthrough
CT: control target
= control target key end

     0   :  { %18 = vsyncpa [#allocation3], 0  ;;  %s4207_s0 = inlined_call_operand.vmem [shape: f32[64,6], index: 0, kind: input, shape index: {}]   ;;  %s4208_s1 = inlined_call_operand.vmem [shape: f32[6,96], index: 1, kind: input, shape index: {}]   ;;  %s4209_s2 = inlined_call_operand.vmem [shape: f32[32,96], index: 2, kind: input, shape index: {}]   ;;  %s4210_s3 = inlined_call_operand.vmem [shape: f32[1,96], index: 3, kind: input, shape index: {}]   ;;  %s4211_s4 = inlined_call_operand.vmem [shape: f32[1,96], index: 4, kind: input, shape index: {}]   ;;  %s4212_s5 = inlined_call_operand.vmem [shape: f32[32,96], index: 5, kind: input, shape index: {}]   ;;  %s4213_s6 = inlined_call_operand.vmem [shape: f32[32,96], index: 6, kind: input, shape index: {}]   ;;  %s4214_s7 = inlined_call_operand.vmem [shape: f32[1,96], index: 7, kind: input, shape index: {}]   ;;  %s4215_s8 = inlined_call_operand.vmem [shape: f32[1,96], index: 8, kind: input, shape index: {}]   ;;  %s4216_s9 = inlined_call_operand.vmem [shape: f32[8,8,8], index: 9, kind: input, shape index: {}]   ;;  %s4217_s10 = inlined_call_operand.vmem [shape: f32[32,3], index: 10, kind: input, shape index: {}]   ;;  %s4218_s11 = inlined_call_operand.vmem [shape: f32[32,1], index: 11, kind: input, shape index: {}]   ;;  %s4219_s12 = inlined_call_operand.vmem [shape: f32[1,10], index: 12, kind: input, shape index: {}]   ;;  %s4220_s13 = inlined_call_operand.vmem [shape: f32[8,1], index: 13, kind: output, shape index: {}]  }
   0x1   :  { %s49_s27 = sshll.u32 %s4219_s12, 4  ;;  %s50_s27 = int_to_ptr.vmem [resolvable:$true] %s49_s27 }
   0x2   :  { %s3434_s28 = scalar_lea.vmem %s50_s27, 16  ;;  %p3439_p1 = scmp.lt.s32.totalorder %s50_s27, %s50_s27 }
   0x3   :  { %p3435_p0 = scmp.ne.s32.totalorder %s50_s27, %s3434_s28  ;;  %p3440_p2 = scmp.lt.s32.totalorder %s3434_s28, %s3434_s28 }
   0x5   :  { %p3441_p3 = por %p3440_p2, %p3439_p1 }
   0x7   :  { %p3442_p4 = pnand %p3441_p3, %p3435_p0 }
   0x9   :  { %3445 = shalt.err (!%p3442_p4)
}
   0xa   :  { %s3448_s29 = smov [#allocation2]  }
   0xb   :  { %52 = dma.vmem_to_smem %s50_s27, 16, %s3448_s29, [#allocation3]  }
   0xc   :  { %3446 = dma.done.wait [#allocation3], 16  }
   0xd   :  { %3447 = vsyncadd [#allocation3], 4294967280 }
   0xe   :  { %56 = sfence }
   0xf   :  { %v65_v0 = vld [vmem:[%s4208_s1] sm:$0x3f]  ;;  %vm98_vm0 = vcmask 1045504   ;;  %vm73_vm1 = vcmask 48128   ;;  %v62_v2 = vld [vmem:[%s4207_s0 + $0x28] sm:$0xff]  ;;  %v3544_v3 = vld [vmem:[%s4209_s2 + $0x18] sm:$0xff] }
  0x10   :  { %v61_v1 = vld [vmem:[%s4207_s0 + $0x20] sm:$0xff]  ;;  %3305 = vmatprep.subr.msk.mxu1 %vm98_vm0, %v65_v0  ;;  %v63_v4 = vld [vmem:[%s4207_s0 + $0x30] sm:$0xff]  ;;  %3000 = vmatprep.subr.msk.mxu0 %vm98_vm0, %v65_v0  ;;  %v3449_v5 = vmov 0.0   ;;  %v64_v8 = vld [vmem:[%s4207_s0 + $0x38] sm:$0xff]  ;;  %vm3450_vm2 = vmmov 0   ;;  %s3451_s17 = smov 64  }
  0x11   :  { %3008 = vmatprep.mubr.msk.f32.mxu1 %vm73_vm1, %v61_v1  ;;  %3306 = vmatpush3.msk.msra.mxu1 %vm98_vm0, %v65_v0  ;;  %v3556_v6 = vld [vmem:[%s4209_s2 + $0x10] sm:$0xff]  ;;  %v57_v7 = vld [vmem:[%s4207_s0] sm:$0xff]  ;;  %v3570_v9 = vld [vmem:[%s4209_s2 + $0x8] sm:$0xff]  ;;  %s3452_s20 = smov 96   ;;  %vm240_vm3 = vcmask 261120   ;;  %s2495_s18 = sld [smem:[#allocation2]] }
  0x12   :  { %3009 = vmatmul.mubr.msk.f32.vlgmr.msra.gmra.mxu1 %vm73_vm1, %v62_v2  ;;  %3014 = vmatprep.subr.mxu1 %v3449_v5  ;;  %v58_v10 = vld [vmem:[%s4207_s0 + $0x8] sm:$0xff]  ;;  %v3583_v11 = vld [vmem:[%s4209_s2] sm:$0xff]  ;;  %v3623_v33 = vld [vmem:[%s4213_s6 + $0x18] sm:$0xff]  ;;  %s2844_s19 = sld [smem:[#allocation2 + $0x2]]  ;;  %vm2606_vm6 = vcmask 64512   ;;  %s3455_s21 = smov 2  }
  0x13   :  { %3015 = vmatpush3.msra.mxu1 %v3544_v3  ;;  %3011 = vmatprep.mubr.msk.f32.mxu1 %vm73_vm1, %v63_v4  ;;  %v3607_v16 = vld [vmem:[%s4211_s4] ss:$0 sm:$0xff]  ;;  %v59_v34 = vld [vmem:[%s4207_s0 + $0x10] sm:$0xff]  ;;  %v60_v36 = vld [vmem:[%s4207_s0 + $0x18] sm:$0xff]  ;;  %s2848_s26 = sld [smem:[#allocation2 + $0x4]]  ;;  %s3456_s23 = smov 126  }
  0x14   :  { %3016 = vmatprep.subr.mxu1 %v3449_v5  ;;  %3001 = vmatpush3.msk.msra.mxu0 %vm98_vm0, %v65_v0  ;;  %v3616_v22 = vld [vmem:[%s4210_s3] ss:$0 sm:$0xff]  ;;  %v3631_v35 = vld [vmem:[%s4213_s6 + $0x10] sm:$0xff]  ;;  %v3643_v37 = vld [vmem:[%s4213_s6 + $0x8] sm:$0xff]  ;;  %s2850_s29 = sld [smem:[#allocation2 + $0x5]]  ;;  %vm2782_vm8 = vcmask 7168  }
  0x15   :  { %3017 = vmatpush3.msra.mxu1 %v3556_v6  ;;  %3002 = vmatprep.mubr.msk.f32.mxu0 %vm73_vm1, %v57_v7  ;;  %v3648_v38 = vld [vmem:[%s4212_s5 + $0x18] sm:$0xff]  ;;  %v3656_v39 = vld [vmem:[%s4212_s5 + $0x10] sm:$0xff]  ;;  %v3662_v40 = vld [vmem:[%s4213_s6] sm:$0xff]  ;;  %s2852_s14 = sld [smem:[#allocation2 + $0x6]] }
  0x16   :  { %3012 = vmatmul.mubr.msk.f32.gmra.mxu1 %vm73_vm1, %v64_v8  ;;  %3018 = vmatprep.subr.mxu1 %v3449_v5  ;;  %v3670_v41 = vld [vmem:[%s4212_s5 + $0x8] sm:$0xff]  ;;  %v3679_v42 = vld [vmem:[%s4212_s5] sm:$0xff]  ;;  %s2858_s22 = sld [smem:[#allocation2 + $0x9]] }
  0x17   :  { %3019 = vmatpush3.msra.mxu1 %v3570_v9  ;;  %3003 = vmatmul.mubr.msk.f32.vlgmr.msra.gmra.mxu0 %vm73_vm1, %v58_v10  ;;  %v3709_v51 = vld [vmem:[%s4215_s8] ss:$0 sm:$0xff] }
  0x18   :  { %3020 = vmatprep.subr.mxu1 %v3449_v5  ;;  %3022 = vmatprep.mubr.msk.f32.mxu1 %vm3450_vm2, %v3449_v5  ;;  %v3738_v56 = vld [vmem:[%s4214_s7] ss:$0 sm:$0xff] }
  0x19   :  { %3021 = vmatpush3.msra.mxu1 %v3583_v11  ;;  %3036 = vmatprep.subr.mxu0 %v3449_v5 }
  0x1a   :  { %3023 = vmatmul.mubr.f32.vlgmr.msra.gmra.mxu1 %v3449_v5  ;;  %3025 = vmatprep.subr.mxu1 %v3449_v5 }
  0x1b   :  { %3033 = vmatprep.mubr.msk.f32.mxu1 %vm3450_vm2, %v3449_v5  ;;  %3037 = vmatpush3.msra.mxu0 %v3623_v33 }
  0x1c   :  { %3005 = vmatprep.mubr.msk.f32.mxu0 %vm73_vm1, %v59_v34  ;;  %3038 = vmatprep.subr.mxu0 %v3449_v5 }
  0x1d   :  { %3006 = vmatmul.mubr.msk.f32.gmra.mxu0 %vm73_vm1, %v60_v36  ;;  %3026 = vmatpush3.msra.mxu1 %v3648_v38 }
  0x1e   :  { %3039 = vmatpush3.msra.mxu0 %v3631_v35  ;;  %3044 = vmatprep.mubr.msk.f32.mxu0 %vm3450_vm2, %v3449_v5 }
  0x1f   :  { %3040 = vmatprep.subr.mxu0 %v3449_v5  ;;  %3027 = vmatprep.subr.mxu1 %v3449_v5 }
  0x20   :  { %3041 = vmatpush3.msra.mxu0 %v3643_v37  ;;  %3028 = vmatpush3.msra.mxu1 %v3656_v39 }
  0x21   :  { %3042 = vmatprep.subr.mxu0 %v3449_v5  ;;  %3029 = vmatprep.subr.mxu1 %v3449_v5 }
  0x22   :  { %3043 = vmatpush3.msra.mxu0 %v3662_v40  ;;  %3030 = vmatpush3.msra.mxu1 %v3670_v41 }
  0x23   :  { %3045 = vmatmul.mubr.f32.vlgmr.msra.gmra.mxu0 %v3449_v5  ;;  %3031 = vmatprep.subr.mxu1 %v3449_v5 }
  0x24   :  { %3032 = vmatpush3.msra.mxu1 %v3679_v42  ;;  %3058 = vmatprep.subr.mxu0 %v3449_v5 }
  0x25   :  { %3047 = vmatprep.subr.mxu1 %v3449_v5  ;;  %3059 = vmatpush3.msra.mxu0 %v3648_v38 }
  0x26   :  { %3060 = vmatprep.subr.mxu0 %v3449_v5  ;;  %3066 = vmatprep.mubr.msk.f32.mxu0 %vm3450_vm2, %v3449_v5 }
  0x27   :  { %3061 = vmatpush3.msra.mxu0 %v3656_v39 }
  0x28   :  { %3062 = vmatprep.subr.mxu0 %v3449_v5 }
  0x29   :  { %3063 = vmatpush3.msra.mxu0 %v3670_v41 }
  0x2a   :  { %3064 = vmatprep.subr.mxu0 %v3449_v5 }
  0x2b   :  { %3065 = vmatpush3.msra.mxu0 %v3679_v42 }
  0x2c   :  { %3080 = vmatprep.subr.mxu0 %v3449_v5 }
  0xd2   :  { %v3596_v12 = vpop.f32.mrf.mxu1 }
  0xd4   :  { %v3598_v13 = vpop.f32.mrf.mxu1 }
  0xd6   :  { %v3600_v14 = vpop.f32.mrf.mxu1 }
  0xd7   :  { %v3611_v20 = vpop.f32.mrf.mxu0 }
  0xd8   :  { %v3602_v15 = vpop.f32.mrf.mxu1  ;;  %v174_v10 = vadd.f32 %v3611_v20, %v3616_v22 }
  0xd9   :  { %v168_v21 = vpop.f32.mrf.mxu0 }
  0xda   :  { %v310_v17 = vpop.f32.mrf.mxu1  ;;  %v169_v23 = vadd.f32 %v3616_v22, %v168_v21 }
  0xdb   :  { %v311_v18 = vadd.f32 %v3607_v16, %v310_v17 }
  0xdc   :  { %v3024_v19 = vpop.f32.mrf.mxu1 }
  0xdd   :  { %322 = vrot.lane.b32.xlu0 %v311_v18, %s3451_s17  ;;  %v314_v24 = vadd.f32 %v311_v18, %v169_v23  ;;  %v3702_v49 = vpop.f32.mrf.mxu0 }
  0xdf   :  { %v2802_v25 = vmul.f32 -1.442695, %v314_v24  ;;  %v3704_v50 = vpop.f32.mrf.mxu0 }
  0xe1   :  { %3318 = vpow2.f32 %v2802_v25 }
  0xe3   :  { %v481_v52 = vpop.f32.mrf.mxu0 }
  0xe4   :  { %v482_v53 = vadd.f32 %v3709_v51, %v481_v52 }
  0xe5   :  { %v3046_v54 = vpop.f32.mrf.mxu0 }
  0xee   :  { %v3319_v26 = vpop.eup %3318 }
  0xef   :  { %v318_v27 = vadd.f32 1.0, %v3319_v26 }
  0xf1   :  { %3320 = vrcp.f32 %v318_v27 }
  0xfe   :  { %v3321_v28 = vpop.eup %3320 }
  0xff   :  { %v332_v44 = vsub.f32 1.0, %v3321_v28  ;;  %v338_v46 = vmul.f32 0.0, %v3321_v28 }
 0x14f   :  { %v323_v29 = vpop.permute.xlu0 %322 }
 0x150   :  { %v325_v30 = vmul.f32 %v3321_v28, %v323_v29 }
 0x152   :  { %327 = vrot.lane.b32.xlu0 %v325_v30, %s3451_s17 }
 0x1c4   :  { %v328_v31 = vpop.permute.xlu0 %327 }
 0x1c5   :  { %v330_v32 = vadd.f32 %v328_v31, %v169_v23 }
 0x1c7   :  { %3322 = vtanh.f32 %v330_v32 }
 0x1d4   :  { %v3323_v43 = vpop.eup %3322 }
 0x1d5   :  { %334 = vrot.lane.b32.xlu1 %v3323_v43, %s3452_s20 }
 0x247   :  { %v335_v45 = vpop.permute.xlu1 %334 }
 0x248   :  { %v337_v47 = vmul.f32 %v335_v45, %v332_v44 }
 0x24a   :  { %v3698_v48 = vadd.f32 %v338_v46, %v337_v47 }
 0x24c   :  { %341 = vrot.lane.b32.xlu1 %v3698_v48, %s3452_s20 }
 0x250   :  { %493 = vrot.lane.b32.xlu1 %v482_v53, %s3451_s17 }
 0x2be   :  { %v342_v55 = vpop.permute.xlu1 %341 }
 0x2bf   :  { %3034 = vmatmul.mubr.msk.f32.vlgmr.msra.gmra.mxu1 %vm240_vm3, %v342_v55 }
 0x2c0   :  { %3048 = vmatpush3.msra.mxu1 %v3544_v3  ;;  %3055 = vmatprep.mubr.msk.f32.mxu1 %vm3450_vm2, %v3449_v5 }
 0x2c1   :  { %3049 = vmatprep.subr.mxu1 %v3449_v5 }
 0x2c2   :  { %3050 = vmatpush3.msra.mxu1 %v3556_v6  ;;  %v494_v4 = vpop.permute.xlu1 %493 }
 0x2c3   :  { %3051 = vmatprep.subr.mxu1 %v3449_v5 }
 0x2c4   :  { %3052 = vmatpush3.msra.mxu1 %v3570_v9 }
 0x2c5   :  { %3053 = vmatprep.subr.mxu1 %v3449_v5 }
 0x2c6   :  { %3054 = vmatpush3.msra.mxu1 %v3583_v11 }
 0x2c7   :  { %3056 = vmatmul.mubr.msk.f32.vlgmr.msra.gmra.mxu1 %vm240_vm3, %v342_v55  ;;  %3069 = vmatprep.subr.mxu1 %v3449_v5 }
 0x2c8   :  { %3070 = vmatpush3.msra.mxu1 %v3623_v33  ;;  %3077 = vmatprep.mubr.msk.f32.mxu1 %vm3450_vm2, %v3449_v5 }
 0x2c9   :  { %3071 = vmatprep.subr.mxu1 %v3449_v5 }
 0x2ca   :  { %3072 = vmatpush3.msra.mxu1 %v3631_v35 }
 0x2cb   :  { %3073 = vmatprep.subr.mxu1 %v3449_v5 }
 0x2cc   :  { %3074 = vmatpush3.msra.mxu1 %v3643_v37 }
 0x2cd   :  { %3075 = vmatprep.subr.mxu1 %v3449_v5 }
 0x2ce   :  { %3076 = vmatpush3.msra.mxu1 %v3662_v40 }
 0x2cf   :  { %3091 = vmatprep.subr.mxu1 %v3449_v5 }
 0x37f   :  { %v411_v57 = vpop.f32.mrf.mxu1 }
 0x380   :  { %v412_v58 = vadd.f32 %v3738_v56, %v411_v57 }
 0x381   :  { %v3035_v59 = vpop.f32.mrf.mxu1 }
 0x382   :  { %v485_v60 = vadd.f32 %v482_v53, %v412_v58 }
 0x384   :  { %v2804_v61 = vmul.f32 -1.442695, %v485_v60 }
 0x386   :  { %3324 = vpow2.f32 %v2804_v61 }
 0x387   :  { %v577_v62 = vpop.f32.mrf.mxu1 }
 0x388   :  { %v578_v63 = vadd.f32 %v3607_v16, %v577_v62 }
 0x389   :  { %v3057_v0 = vpop.f32.mrf.mxu1 }
 0x38a   :  { %589 = vrot.lane.b32.xlu0 %v578_v63, %s3451_s17  ;;  %v581_v17 = vadd.f32 %v578_v63, %v174_v10 }
 0x38c   :  { %v2806_v18 = vmul.f32 -1.442695, %v581_v17  ;;  %v179_v17 = vadd.f32 %v3616_v22, %v3704_v50 }
 0x393   :  { %v3325_v1 = vpop.eup %3324 }
 0x394   :  { %v489_v2 = vadd.f32 1.0, %v3325_v1 }
 0x396   :  { %3326 = vrcp.f32 %v489_v2 }
 0x397   :  { %3328 = vpow2.f32 %v2806_v18 }
 0x3a3   :  { %v3327_v7 = vpop.eup %3326 }
 0x3a4   :  { %v496_v8 = vmul.f32 %v3327_v7, %v494_v4  ;;  %v3329_v19 = vpop.eup %3328  ;;  %v503_v31 = vsub.f32 1.0, %v3327_v7  ;;  %v509_v34 = vmul.f32 0.0, %v3327_v7 }
 0x3a5   :  { %v585_v21 = vadd.f32 1.0, %v3329_v19 }
 0x3a6   :  { %498 = vrot.lane.b32.xlu1 %v496_v8, %s3451_s17 }
 0x3a7   :  { %3330 = vrcp.f32 %v585_v21 }
 0x3b4   :  { %v3331_v23 = vpop.eup %3330 }
 0x3b5   :  { %v599_v44 = vsub.f32 1.0, %v3331_v23  ;;  %v605_v46 = vmul.f32 %v3331_v23, %v3698_v48 }
 0x3fc   :  { %v590_v24 = vpop.permute.xlu0 %589 }
 0x3fd   :  { %v592_v25 = vmul.f32 %v3331_v23, %v590_v24 }
 0x3ff   :  { %594 = vrot.lane.b32.xlu0 %v592_v25, %s3451_s17 }
 0x418   :  { %v499_v26 = vpop.permute.xlu1 %498 }
 0x419   :  { %v501_v27 = vadd.f32 %v499_v26, %v412_v58 }
 0x41b   :  { %3332 = vtanh.f32 %v501_v27 }
 0x428   :  { %v3333_v28 = vpop.eup %3332 }
 0x429   :  { %505 = vrot.lane.b32.xlu1 %v3333_v28, %s3452_s20 }
 0x471   :  { %v595_v29 = vpop.permute.xlu0 %594 }
 0x472   :  { %v597_v30 = vadd.f32 %v595_v29, %v174_v10 }
 0x474   :  { %3334 = vtanh.f32 %v597_v30 }
 0x481   :  { %v3335_v20 = vpop.eup %3334 }
 0x482   :  { %601 = vrot.lane.b32.xlu0 %v3335_v20, %s3452_s20 }
 0x49b   :  { %v506_v32 = vpop.permute.xlu1 %505 }
 0x49c   :  { %v508_v36 = vmul.f32 %v506_v32, %v503_v31 }
 0x49e   :  { %v3749_v43 = vadd.f32 %v509_v34, %v508_v36 }
 0x4a0   :  { %683 = vrot.lane.b32.xlu1 %v3749_v43, %s3452_s20 }
 0x4f4   :  { %v602_v45 = vpop.permute.xlu0 %601 }
 0x4f5   :  { %v604_v47 = vmul.f32 %v602_v45, %v599_v44 }
 0x4f7   :  { %v3754_v52 = vadd.f32 %v605_v46, %v604_v47 }
 0x4f9   :  { %608 = vrot.lane.b32.xlu0 %v3754_v52, %s3452_s20 }
 0x512   :  { %v684_v53 = vpop.permute.xlu1 %683 }
 0x513   :  { %3078 = vmatmul.mubr.msk.f32.vlgmr.msra.gmra.mxu1 %vm240_vm3, %v684_v53 }
 0x514   :  { %3092 = vmatpush3.msra.mxu1 %v3648_v38  ;;  %3099 = vmatprep.mubr.msk.f32.mxu1 %vm3450_vm2, %v3449_v5 }
 0x515   :  { %3093 = vmatprep.subr.mxu1 %v3449_v5 }
 0x516   :  { %3094 = vmatpush3.msra.mxu1 %v3656_v39 }
 0x517   :  { %3095 = vmatprep.subr.mxu1 %v3449_v5 }
 0x518   :  { %3096 = vmatpush3.msra.mxu1 %v3670_v41 }
 0x519   :  { %3097 = vmatprep.subr.mxu1 %v3449_v5 }
 0x51a   :  { %3098 = vmatpush3.msra.mxu1 %v3679_v42 }
 0x51b   :  { %3113 = vmatprep.subr.mxu1 %v3449_v5 }
 0x56b   :  { %v609_v48 = vpop.permute.xlu0 %608 }
 0x56c   :  { %3067 = vmatmul.mubr.msk.f32.vlgmr.msra.gmra.mxu0 %vm240_vm3, %v609_v48 }
 0x56d   :  { %3081 = vmatpush3.msra.mxu0 %v3544_v3  ;;  %3088 = vmatprep.mubr.msk.f32.mxu0 %vm3450_vm2, %v3449_v5 }
 0x56e   :  { %3082 = vmatprep.subr.mxu0 %v3449_v5 }
 0x56f   :  { %3083 = vmatpush3.msra.mxu0 %v3556_v6 }
 0x570   :  { %3084 = vmatprep.subr.mxu0 %v3449_v5 }
 0x571   :  { %3085 = vmatpush3.msra.mxu0 %v3570_v9 }
 0x572   :  { %3086 = vmatprep.subr.mxu0 %v3449_v5 }
 0x573   :  { %3087 = vmatpush3.msra.mxu0 %v3583_v11 }
 0x574   :  { %3089 = vmatmul.mubr.msk.f32.vlgmr.msra.gmra.mxu0 %vm240_vm3, %v609_v48  ;;  %3102 = vmatprep.subr.mxu0 %v3449_v5 }
 0x575   :  { %3103 = vmatpush3.msra.mxu0 %v3623_v33  ;;  %3110 = vmatprep.mubr.msk.f32.mxu0 %vm3450_vm2, %v3449_v5 }
 0x576   :  { %3104 = vmatprep.subr.mxu0 %v3449_v5 }
 0x577   :  { %3105 = vmatpush3.msra.mxu0 %v3631_v35 }
 0x578   :  { %3106 = vmatprep.subr.mxu0 %v3449_v5 }
 0x579   :  { %3107 = vmatpush3.msra.mxu0 %v3643_v37 }
 0x57a   :  { %3108 = vmatprep.subr.mxu0 %v3449_v5 }
 0x57b   :  { %3109 = vmatpush3.msra.mxu0 %v3662_v40 }
 0x57c   :  { %3124 = vmatprep.subr.mxu0 %v3449_v5 }
 0x5d3   :  { %v753_v54 = vpop.f32.mrf.mxu1 }
 0x5d4   :  { %v754_v55 = vadd.f32 %v3709_v51, %v753_v54 }
 0x5d5   :  { %v3079_v57 = vpop.f32.mrf.mxu1 }
 0x5d6   :  { %765 = vrot.lane.b32.xlu1 %v754_v55, %s3451_s17 }
 0x62c   :  { %v678_v58 = vpop.f32.mrf.mxu0 }
 0x62d   :  { %v679_v59 = vadd.f32 %v3738_v56, %v678_v58 }
 0x62e   :  { %v3068_v60 = vpop.f32.mrf.mxu0 }
 0x62f   :  { %v757_v61 = vadd.f32 %v754_v55, %v679_v59 }
 0x631   :  { %v2809_v62 = vmul.f32 -1.442695, %v757_v61 }
 0x633   :  { %3336 = vpow2.f32 %v2809_v62 }
 0x634   :  { %v849_v63 = vpop.f32.mrf.mxu0 }
 0x635   :  { %v850_v0 = vadd.f32 %v3607_v16, %v849_v63 }
 0x636   :  { %v3090_v1 = vpop.f32.mrf.mxu0 }
 0x637   :  { %861 = vrot.lane.b32.xlu0 %v850_v0, %s3451_s17  ;;  %v853_v18 = vadd.f32 %v850_v0, %v179_v17 }
 0x639   :  { %v2811_v19 = vmul.f32 -1.442695, %v853_v18 }
 0x640   :  { %v3337_v2 = vpop.eup %3336 }
 0x641   :  { %v761_v4 = vadd.f32 1.0, %v3337_v2 }
 0x643   :  { %3338 = vrcp.f32 %v761_v4 }
 0x644   :  { %3340 = vpow2.f32 %v2811_v19 }
 0x648   :  { %v766_v8 = vpop.permute.xlu1 %765 }
 0x650   :  { %v3339_v7 = vpop.eup %3338 }
 0x651   :  { %v768_v10 = vmul.f32 %v3339_v7, %v766_v8  ;;  %v3341_v21 = vpop.eup %3340  ;;  %v775_v31 = vsub.f32 1.0, %v3339_v7  ;;  %v781_v34 = vmul.f32 %v3339_v7, %v3749_v43 }
 0x652   :  { %v857_v23 = vadd.f32 1.0, %v3341_v21 }
 0x653   :  { %770 = vrot.lane.b32.xlu1 %v768_v10, %s3451_s17 }
 0x654   :  { %3342 = vrcp.f32 %v857_v23 }
 0x661   :  { %v3343_v24 = vpop.eup %3342 }
 0x662   :  { %v871_v45 = vsub.f32 1.0, %v3343_v24  ;;  %v877_v47 = vmul.f32 %v3343_v24, %v3754_v52 }
 0x6a9   :  { %v862_v25 = vpop.permute.xlu0 %861 }
 0x6aa   :  { %v864_v26 = vmul.f32 %v3343_v24, %v862_v25 }
 0x6ac   :  { %866 = vrot.lane.b32.xlu0 %v864_v26, %s3451_s17 }
 0x6c5   :  { %v771_v27 = vpop.permute.xlu1 %770 }
 0x6c6   :  { %v773_v28 = vadd.f32 %v771_v27, %v679_v59 }
 0x6c8   :  { %3344 = vtanh.f32 %v773_v28 }
 0x6d5   :  { %v3345_v29 = vpop.eup %3344 }
 0x6d6   :  { %777 = vrot.lane.b32.xlu1 %v3345_v29, %s3452_s20 }
 0x71e   :  { %v867_v30 = vpop.permute.xlu0 %866 }
 0x71f   :  { %v869_v20 = vadd.f32 %v867_v30, %v179_v17  ;;  %v184_v17 = vadd.f32 %v3702_v49, %v3616_v22 }
 0x721   :  { %3346 = vtanh.f32 %v869_v20 }
 0x72e   :  { %v3347_v50 = vpop.eup %3346 }
 0x72f   :  { %873 = vrot.lane.b32.xlu0 %v3347_v50, %s3452_s20 }
 0x748   :  { %v778_v32 = vpop.permute.xlu1 %777 }
 0x749   :  { %v780_v36 = vmul.f32 %v778_v32, %v775_v31 }
 0x74b   :  { %v3803_v44 = vadd.f32 %v781_v34, %v780_v36 }
 0x74d   :  { %955 = vrot.lane.b32.xlu1 %v3803_v44, %s3452_s20 }
 0x7a1   :  { %v874_v46 = vpop.permute.xlu0 %873 }
 0x7a2   :  { %v876_v53 = vmul.f32 %v874_v46, %v871_v45 }
 0x7a4   :  { %v3808_v48 = vadd.f32 %v877_v47, %v876_v53 }
 0x7a6   :  { %880 = vrot.lane.b32.xlu0 %v3808_v48, %s3452_s20 }
 0x7bf   :  { %v956_v54 = vpop.permute.xlu1 %955 }
 0x7c0   :  { %3111 = vmatmul.mubr.msk.f32.vlgmr.msra.gmra.mxu0 %vm240_vm3, %v956_v54 }
 0x7c1   :  { %3125 = vmatpush3.msra.mxu0 %v3648_v38  ;;  %3132 = vmatprep.mubr.msk.f32.mxu0 %vm3450_vm2, %v3449_v5 }
 0x7c2   :  { %3126 = vmatprep.subr.mxu0 %v3449_v5 }
 0x7c3   :  { %3127 = vmatpush3.msra.mxu0 %v3656_v39 }
 0x7c4   :  { %3128 = vmatprep.subr.mxu0 %v3449_v5 }
 0x7c5   :  { %3129 = vmatpush3.msra.mxu0 %v3670_v41 }
 0x7c6   :  { %3130 = vmatprep.subr.mxu0 %v3449_v5 }
 0x7c7   :  { %3131 = vmatpush3.msra.mxu0 %v3679_v42 }
 0x7c8   :  { %3146 = vmatprep.subr.mxu0 %v3449_v5 }
 0x818   :  { %v881_v43 = vpop.permute.xlu0 %880 }
 0x819   :  { %3100 = vmatmul.mubr.msk.f32.vlgmr.msra.gmra.mxu1 %vm240_vm3, %v881_v43 }
 0x81a   :  { %3114 = vmatpush3.msra.mxu1 %v3544_v3  ;;  %3121 = vmatprep.mubr.msk.f32.mxu1 %vm3450_vm2, %v3449_v5 }
 0x81b   :  { %3115 = vmatprep.subr.mxu1 %v3449_v5 }
 0x81c   :  { %3116 = vmatpush3.msra.mxu1 %v3556_v6 }
 0x81d   :  { %3117 = vmatprep.subr.mxu1 %v3449_v5 }
 0x81e   :  { %3118 = vmatpush3.msra.mxu1 %v3570_v9 }
 0x81f   :  { %3119 = vmatprep.subr.mxu1 %v3449_v5 }
 0x820   :  { %3120 = vmatpush3.msra.mxu1 %v3583_v11 }
 0x821   :  { %3122 = vmatmul.mubr.msk.f32.vlgmr.msra.gmra.mxu1 %vm240_vm3, %v881_v43  ;;  %3135 = vmatprep.subr.mxu1 %v3449_v5 }
 0x822   :  { %3136 = vmatpush3.msra.mxu1 %v3623_v33  ;;  %3143 = vmatprep.mubr.msk.f32.mxu1 %vm3450_vm2, %v3449_v5 }
 0x823   :  { %3137 = vmatprep.subr.mxu1 %v3449_v5 }
 0x824   :  { %3138 = vmatpush3.msra.mxu1 %v3631_v35 }
 0x825   :  { %3139 = vmatprep.subr.mxu1 %v3449_v5 }
 0x826   :  { %3140 = vmatpush3.msra.mxu1 %v3643_v37 }
 0x827   :  { %3141 = vmatprep.subr.mxu1 %v3449_v5 }
 0x828   :  { %3142 = vmatpush3.msra.mxu1 %v3662_v40 }
 0x829   :  { %3157 = vmatprep.subr.mxu1 %v3449_v5 }
 0x880   :  { %v1025_v52 = vpop.f32.mrf.mxu0 }
 0x881   :  { %v1026_v55 = vadd.f32 %v3709_v51, %v1025_v52 }
 0x882   :  { %v3112_v57 = vpop.f32.mrf.mxu0 }
 0x883   :  { %1037 = vrot.lane.b32.xlu1 %v1026_v55, %s3451_s17 }
 0x8d9   :  { %v950_v58 = vpop.f32.mrf.mxu1 }
 0x8da   :  { %v951_v59 = vadd.f32 %v3738_v56, %v950_v58 }
 0x8db   :  { %v3101_v60 = vpop.f32.mrf.mxu1 }
 0x8dc   :  { %v1029_v61 = vadd.f32 %v1026_v55, %v951_v59 }
 0x8de   :  { %v2814_v62 = vmul.f32 -1.442695, %v1029_v61 }
 0x8e0   :  { %3348 = vpow2.f32 %v2814_v62 }
 0x8e1   :  { %v1121_v63 = vpop.f32.mrf.mxu1 }
 0x8e2   :  { %v1122_v0 = vadd.f32 %v3607_v16, %v1121_v63 }
 0x8e3   :  { %v3123_v1 = vpop.f32.mrf.mxu1 }
 0x8e4   :  { %1133 = vrot.lane.b32.xlu0 %v1122_v0, %s3451_s17  ;;  %v1125_v18 = vadd.f32 %v1122_v0, %v184_v17 }
 0x8e6   :  { %v2816_v19 = vmul.f32 -1.442695, %v1125_v18 }
 0x8ed   :  { %v3349_v2 = vpop.eup %3348 }
 0x8ee   :  { %v1033_v4 = vadd.f32 1.0, %v3349_v2 }
 0x8f0   :  { %3350 = vrcp.f32 %v1033_v4 }
 0x8f1   :  { %3352 = vpow2.f32 %v2816_v19 }
 0x8f5   :  { %v1038_v8 = vpop.permute.xlu1 %1037 }
 0x8fd   :  { %v3351_v7 = vpop.eup %3350 }
 0x8fe   :  { %v1040_v10 = vmul.f32 %v3351_v7, %v1038_v8  ;;  %v3353_v21 = vpop.eup %3352  ;;  %v1047_v50 = vsub.f32 1.0, %v3351_v7  ;;  %v1053_v32 = vmul.f32 %v3351_v7, %v3803_v44 }
 0x8ff   :  { %v1129_v23 = vadd.f32 1.0, %v3353_v21 }
 0x900   :  { %1042 = vrot.lane.b32.xlu1 %v1040_v10, %s3451_s17  ;;  %v189_v10 = vadd.f32 %v3616_v22, %v3598_v13 }
 0x901   :  { %3354 = vrcp.f32 %v1129_v23 }
 0x90e   :  { %v3355_v24 = vpop.eup %3354 }
 0x90f   :  { %v1143_v45 = vsub.f32 1.0, %v3355_v24  ;;  %v1149_v47 = vmul.f32 %v3355_v24, %v3808_v48 }
 0x956   :  { %v1134_v25 = vpop.permute.xlu0 %1133 }
 0x957   :  { %v1136_v26 = vmul.f32 %v3355_v24, %v1134_v25 }
 0x959   :  { %1138 = vrot.lane.b32.xlu0 %v1136_v26, %s3451_s17 }
 0x972   :  { %v1043_v27 = vpop.permute.xlu1 %1042 }
 0x973   :  { %v1045_v28 = vadd.f32 %v1043_v27, %v951_v59 }
 0x975   :  { %3356 = vtanh.f32 %v1045_v28 }
 0x982   :  { %v3357_v29 = vpop.eup %3356 }
 0x983   :  { %1049 = vrot.lane.b32.xlu1 %v3357_v29, %s3452_s20 }
 0x9cb   :  { %v1139_v30 = vpop.permute.xlu0 %1138 }
 0x9cc   :  { %v1141_v20 = vadd.f32 %v1139_v30, %v184_v17 }
 0x9ce   :  { %3358 = vtanh.f32 %v1141_v20 }
 0x9db   :  { %v3359_v49 = vpop.eup %3358 }
 0x9dc   :  { %1145 = vrot.lane.b32.xlu0 %v3359_v49, %s3452_s20 }
 0x9f5   :  { %v1050_v31 = vpop.permute.xlu1 %1049 }
 0x9f6   :  { %v1052_v34 = vmul.f32 %v1050_v31, %v1047_v50 }
 0x9f8   :  { %v3857_v36 = vadd.f32 %v1053_v32, %v1052_v34 }
 0x9fa   :  { %1227 = vrot.lane.b32.xlu1 %v3857_v36, %s3452_s20 }
 0xa4e   :  { %v1146_v46 = vpop.permute.xlu0 %1145 }
 0xa4f   :  { %v1148_v53 = vmul.f32 %v1146_v46, %v1143_v45 }
 0xa51   :  { %v3862_v54 = vadd.f32 %v1149_v47, %v1148_v53 }
 0xa53   :  { %1152 = vrot.lane.b32.xlu0 %v3862_v54, %s3452_s20 }
 0xa6c   :  { %v1228_v43 = vpop.permute.xlu1 %1227 }
 0xa6d   :  { %3144 = vmatmul.mubr.msk.f32.vlgmr.msra.gmra.mxu1 %vm240_vm3, %v1228_v43 }
 0xa6e   :  { %3158 = vmatpush3.msra.mxu1 %v3648_v38  ;;  %3165 = vmatprep.mubr.msk.f32.mxu1 %vm3450_vm2, %v3449_v5 }
 0xa6f   :  { %3159 = vmatprep.subr.mxu1 %v3449_v5 }
 0xa70   :  { %3160 = vmatpush3.msra.mxu1 %v3656_v39 }
 0xa71   :  { %3161 = vmatprep.subr.mxu1 %v3449_v5 }
 0xa72   :  { %3162 = vmatpush3.msra.mxu1 %v3670_v41 }
 0xa73   :  { %3163 = vmatprep.subr.mxu1 %v3449_v5 }
 0xa74   :  { %3164 = vmatpush3.msra.mxu1 %v3679_v42 }
 0xa75   :  { %3179 = vmatprep.subr.mxu1 %v3449_v5 }
 0xac5   :  { %v1153_v44 = vpop.permute.xlu0 %1152 }
 0xac6   :  { %3133 = vmatmul.mubr.msk.f32.vlgmr.msra.gmra.mxu0 %vm240_vm3, %v1153_v44 }
 0xac7   :  { %3147 = vmatpush3.msra.mxu0 %v3544_v3  ;;  %3154 = vmatprep.mubr.msk.f32.mxu0 %vm3450_vm2, %v3449_v5 }
 0xac8   :  { %3148 = vmatprep.subr.mxu0 %v3449_v5 }
 0xac9   :  { %3149 = vmatpush3.msra.mxu0 %v3556_v6 }
 0xaca   :  { %3150 = vmatprep.subr.mxu0 %v3449_v5 }
 0xacb   :  { %3151 = vmatpush3.msra.mxu0 %v3570_v9 }
 0xacc   :  { %3152 = vmatprep.subr.mxu0 %v3449_v5 }
 0xacd   :  { %3153 = vmatpush3.msra.mxu0 %v3583_v11 }
 0xace   :  { %3155 = vmatmul.mubr.msk.f32.vlgmr.msra.gmra.mxu0 %vm240_vm3, %v1153_v44  ;;  %3168 = vmatprep.subr.mxu0 %v3449_v5 }
 0xacf   :  { %3169 = vmatpush3.msra.mxu0 %v3623_v33  ;;  %3176 = vmatprep.mubr.msk.f32.mxu0 %vm3450_vm2, %v3449_v5 }
 0xad0   :  { %3170 = vmatprep.subr.mxu0 %v3449_v5 }
 0xad1   :  { %3171 = vmatpush3.msra.mxu0 %v3631_v35 }
 0xad2   :  { %3172 = vmatprep.subr.mxu0 %v3449_v5 }
 0xad3   :  { %3173 = vmatpush3.msra.mxu0 %v3643_v37 }
 0xad4   :  { %3174 = vmatprep.subr.mxu0 %v3449_v5 }
 0xad5   :  { %3175 = vmatpush3.msra.mxu0 %v3662_v40 }
 0xad6   :  { %3190 = vmatprep.subr.mxu0 %v3449_v5 }
 0xb2d   :  { %v1297_v48 = vpop.f32.mrf.mxu1 }
 0xb2e   :  { %v1298_v52 = vadd.f32 %v3709_v51, %v1297_v48 }
 0xb2f   :  { %v3145_v55 = vpop.f32.mrf.mxu1 }
 0xb30   :  { %1309 = vrot.lane.b32.xlu0 %v1298_v52, %s3451_s17 }
 0xb86   :  { %v1222_v57 = vpop.f32.mrf.mxu0 }
 0xb87   :  { %v1223_v58 = vadd.f32 %v3738_v56, %v1222_v57 }
 0xb88   :  { %v3134_v59 = vpop.f32.mrf.mxu0 }
 0xb89   :  { %v1301_v60 = vadd.f32 %v1298_v52, %v1223_v58 }
 0xb8b   :  { %v2819_v61 = vmul.f32 -1.442695, %v1301_v60 }
 0xb8d   :  { %3360 = vpow2.f32 %v2819_v61 }
 0xb8e   :  { %v1393_v62 = vpop.f32.mrf.mxu0 }
 0xb8f   :  { %v1394_v63 = vadd.f32 %v3607_v16, %v1393_v62 }
 0xb90   :  { %v3156_v0 = vpop.f32.mrf.mxu0 }
 0xb91   :  { %1405 = vrot.lane.b32.xlu1 %v1394_v63, %s3451_s17  ;;  %v1397_v17 = vadd.f32 %v1394_v63, %v189_v10  ;;  %v194_v0 = vadd.f32 %v3596_v12, %v3616_v22 }
 0xb93   :  { %v2821_v18 = vmul.f32 -1.442695, %v1397_v17 }
 0xb9a   :  { %v3361_v1 = vpop.eup %3360 }
 0xb9b   :  { %v1305_v2 = vadd.f32 1.0, %v3361_v1 }
 0xb9d   :  { %3362 = vrcp.f32 %v1305_v2 }
 0xb9e   :  { %3364 = vpow2.f32 %v2821_v18 }
 0xba2   :  { %v1310_v7 = vpop.permute.xlu0 %1309 }
 0xbaa   :  { %v3363_v4 = vpop.eup %3362 }
 0xbab   :  { %v1312_v8 = vmul.f32 %v3363_v4, %v1310_v7  ;;  %v3365_v19 = vpop.eup %3364  ;;  %v1319_v20 = vsub.f32 1.0, %v3363_v4  ;;  %v1325_v50 = vmul.f32 %v3363_v4, %v3857_v36 }
 0xbac   :  { %v1401_v21 = vadd.f32 1.0, %v3365_v19 }
 0xbad   :  { %1314 = vrot.lane.b32.xlu0 %v1312_v8, %s3451_s17 }
 0xbae   :  { %3366 = vrcp.f32 %v1401_v21 }
 0xbbb   :  { %v3367_v23 = vpop.eup %3366 }
 0xbbc   :  { %v1415_v34 = vsub.f32 1.0, %v3367_v23  ;;  %v1421_v46 = vmul.f32 %v3367_v23, %v3862_v54 }
 0xc03   :  { %v1406_v24 = vpop.permute.xlu1 %1405 }
 0xc04   :  { %v1408_v25 = vmul.f32 %v3367_v23, %v1406_v24 }
 0xc06   :  { %1410 = vrot.lane.b32.xlu1 %v1408_v25, %s3451_s17 }
 0xc1f   :  { %v1315_v26 = vpop.permute.xlu0 %1314 }
 0xc20   :  { %v1317_v27 = vadd.f32 %v1315_v26, %v1223_v58 }
 0xc22   :  { %3368 = vtanh.f32 %v1317_v27 }
 0xc2f   :  { %v3369_v28 = vpop.eup %3368 }
 0xc30   :  { %1321 = vrot.lane.b32.xlu0 %v3369_v28, %s3452_s20 }
 0xc78   :  { %v1411_v29 = vpop.permute.xlu1 %1410 }
 0xc79   :  { %v1413_v30 = vadd.f32 %v1411_v29, %v189_v10 }
 0xc7b   :  { %3370 = vtanh.f32 %v1413_v30 }
 0xc88   :  { %v3371_v13 = vpop.eup %3370 }
 0xc89   :  { %1417 = vrot.lane.b32.xlu1 %v3371_v13, %s3452_s20 }
 0xca2   :  { %v1322_v49 = vpop.permute.xlu0 %1321 }
 0xca3   :  { %v1324_v31 = vmul.f32 %v1322_v49, %v1319_v20 }
 0xca5   :  { %v3911_v32 = vadd.f32 %v1325_v50, %v1324_v31 }
 0xca7   :  { %1499 = vrot.lane.b32.xlu0 %v3911_v32, %s3452_s20 }
 0xcfb   :  { %v1418_v45 = vpop.permute.xlu1 %1417 }
 0xcfc   :  { %v1420_v47 = vmul.f32 %v1418_v45, %v1415_v34 }
 0xcfe   :  { %v3916_v53 = vadd.f32 %v1421_v46, %v1420_v47 }
 0xd00   :  { %1424 = vrot.lane.b32.xlu1 %v3916_v53, %s3452_s20 }
 0xd19   :  { %v1500_v43 = vpop.permute.xlu0 %1499 }
 0xd1a   :  { %3177 = vmatmul.mubr.msk.f32.vlgmr.msra.gmra.mxu0 %vm240_vm3, %v1500_v43 }
 0xd1b   :  { %3191 = vmatpush3.msra.mxu0 %v3648_v38  ;;  %3198 = vmatprep.mubr.msk.f32.mxu0 %vm3450_vm2, %v3449_v5 }
 0xd1c   :  { %3192 = vmatprep.subr.mxu0 %v3449_v5 }
 0xd1d   :  { %3193 = vmatpush3.msra.mxu0 %v3656_v39 }
 0xd1e   :  { %3194 = vmatprep.subr.mxu0 %v3449_v5 }
 0xd1f   :  { %3195 = vmatpush3.msra.mxu0 %v3670_v41 }
 0xd20   :  { %3196 = vmatprep.subr.mxu0 %v3449_v5 }
 0xd21   :  { %3197 = vmatpush3.msra.mxu0 %v3679_v42 }
 0xd22   :  { %3212 = vmatprep.subr.mxu0 %v3449_v5 }
 0xd72   :  { %v1425_v36 = vpop.permute.xlu1 %1424 }
 0xd73   :  { %3166 = vmatmul.mubr.msk.f32.vlgmr.msra.gmra.mxu1 %vm240_vm3, %v1425_v36 }
 0xd74   :  { %3180 = vmatpush3.msra.mxu1 %v3544_v3  ;;  %3187 = vmatprep.mubr.msk.f32.mxu1 %vm3450_vm2, %v3449_v5 }
 0xd75   :  { %3181 = vmatprep.subr.mxu1 %v3449_v5 }
 0xd76   :  { %3182 = vmatpush3.msra.mxu1 %v3556_v6 }
 0xd77   :  { %3183 = vmatprep.subr.mxu1 %v3449_v5 }
 0xd78   :  { %3184 = vmatpush3.msra.mxu1 %v3570_v9 }
 0xd79   :  { %3185 = vmatprep.subr.mxu1 %v3449_v5 }
 0xd7a   :  { %3186 = vmatpush3.msra.mxu1 %v3583_v11 }
 0xd7b   :  { %3188 = vmatmul.mubr.msk.f32.vlgmr.msra.gmra.mxu1 %vm240_vm3, %v1425_v36  ;;  %3201 = vmatprep.subr.mxu1 %v3449_v5 }
 0xd7c   :  { %3202 = vmatpush3.msra.mxu1 %v3623_v33  ;;  %3209 = vmatprep.mubr.msk.f32.mxu1 %vm3450_vm2, %v3449_v5 }
 0xd7d   :  { %3203 = vmatprep.subr.mxu1 %v3449_v5 }
 0xd7e   :  { %3204 = vmatpush3.msra.mxu1 %v3631_v35 }
 0xd7f   :  { %3205 = vmatprep.subr.mxu1 %v3449_v5 }
 0xd80   :  { %3206 = vmatpush3.msra.mxu1 %v3643_v37 }
 0xd81   :  { %3207 = vmatprep.subr.mxu1 %v3449_v5 }
 0xd82   :  { %3208 = vmatpush3.msra.mxu1 %v3662_v40 }
 0xd83   :  { %3223 = vmatprep.subr.mxu1 %v3449_v5 }
 0xdda   :  { %v1569_v3 = vpop.f32.mrf.mxu0 }
 0xddb   :  { %v1570_v6 = vadd.f32 %v3709_v51, %v1569_v3 }
 0xddc   :  { %v3178_v9 = vpop.f32.mrf.mxu0 }
 0xddd   :  { %1581 = vrot.lane.b32.xlu0 %v1570_v6, %s3451_s17  ;;  %v4041_v9 = vld [vmem:[%s4210_s3] ss:$0 sm:$0xff]  ;;  %s2855_s3 = sld [smem:[#allocation2 + $0x8]] }
 0xe33   :  { %v1494_v11 = vpop.f32.mrf.mxu1 }
 0xe34   :  { %v1495_v54 = vadd.f32 %v3738_v56, %v1494_v11  ;;  %v199_v11 = vadd.f32 %v4041_v9, %v3602_v15 }
 0xe35   :  { %v3167_v44 = vpop.f32.mrf.mxu1 }
 0xe36   :  { %v1573_v48 = vadd.f32 %v1570_v6, %v1495_v54 }
 0xe38   :  { %v2824_v52 = vmul.f32 -1.442695, %v1573_v48 }
 0xe3a   :  { %3372 = vpow2.f32 %v2824_v52 }
 0xe3b   :  { %v1665_v55 = vpop.f32.mrf.mxu1 }
 0xe3c   :  { %v1666_v57 = vadd.f32 %v3607_v16, %v1665_v55 }
 0xe3d   :  { %v3189_v58 = vpop.f32.mrf.mxu1 }
 0xe3e   :  { %1677 = vrot.lane.b32.xlu1 %v1666_v57, %s3451_s17  ;;  %v1669_v1 = vadd.f32 %v1666_v57, %v194_v0 }
 0xe40   :  { %v2826_v2 = vmul.f32 -1.442695, %v1669_v1 }
 0xe47   :  { %v3373_v59 = vpop.eup %3372 }
 0xe48   :  { %v1577_v60 = vadd.f32 1.0, %v3373_v59 }
 0xe4a   :  { %3374 = vrcp.f32 %v1577_v60 }
 0xe4b   :  { %3376 = vpow2.f32 %v2826_v2 }
 0xe4f   :  { %v1582_v62 = vpop.permute.xlu0 %1581 }
 0xe57   :  { %v3375_v61 = vpop.eup %3374 }
 0xe58   :  { %v1584_v63 = vmul.f32 %v3375_v61, %v1582_v62  ;;  %v3377_v4 = vpop.eup %3376  ;;  %v1591_v22 = vsub.f32 1.0, %v3375_v61  ;;  %v1597_v25 = vmul.f32 %v3375_v61, %v3911_v32 }
 0xe59   :  { %v1673_v7 = vadd.f32 1.0, %v3377_v4 }
 0xe5a   :  { %1586 = vrot.lane.b32.xlu0 %v1584_v63, %s3451_s17 }
 0xe5b   :  { %3378 = vrcp.f32 %v1673_v7 }
 0xe68   :  { %v3379_v16 = vpop.eup %3378 }
 0xe69   :  { %v1687_v28 = vsub.f32 1.0, %v3379_v16  ;;  %v1693_v30 = vmul.f32 %v3379_v16, %v3916_v53 }
 0xeb0   :  { %v1678_v8 = vpop.permute.xlu1 %1677 }
 0xeb1   :  { %v1680_v10 = vmul.f32 %v3379_v16, %v1678_v8 }
 0xeb3   :  { %1682 = vrot.lane.b32.xlu1 %v1680_v10, %s3451_s17 }
 0xecc   :  { %v1587_v17 = vpop.permute.xlu0 %1586 }
 0xecd   :  { %v1589_v18 = vadd.f32 %v1587_v17, %v1495_v54 }
 0xecf   :  { %3380 = vtanh.f32 %v1589_v18 }
 0xedc   :  { %v3381_v19 = vpop.eup %3380 }
 0xedd   :  { %1593 = vrot.lane.b32.xlu0 %v3381_v19, %s3452_s20 }
 0xf25   :  { %v1683_v21 = vpop.permute.xlu1 %1682 }
 0xf26   :  { %v1685_v23 = vadd.f32 %v1683_v21, %v194_v0  ;;  %v3424_v21 = vld [vmem:[%s4212_s5 + $0x18] sm:$0xff] }
 0xf28   :  { %3382 = vtanh.f32 %v1685_v23  ;;  %v3425_v23 = vld [vmem:[%s4212_s5 + $0x10] sm:$0xff] }
 0xf35   :  { %v3383_v12 = vpop.eup %3382 }
 0xf36   :  { %1689 = vrot.lane.b32.xlu1 %v3383_v12, %s3452_s20  ;;  %v3426_v12 = vld [vmem:[%s4212_s5 + $0x8] sm:$0xff] }
 0xf4f   :  { %v1594_v24 = vpop.permute.xlu0 %1593 }
 0xf50   :  { %v1596_v26 = vmul.f32 %v1594_v24, %v1591_v22  ;;  %v3427_v22 = vld [vmem:[%s4212_s5] sm:$0xff]  ;;  %s2846_s5 = sld [smem:[#allocation2 + $0x3]] }
 0xf52   :  { %v3965_v27 = vadd.f32 %v1597_v25, %v1596_v26  ;;  %v3428_v25 = vld [vmem:[%s4213_s6 + $0x18] sm:$0xff]  ;;  %v3429_v26 = vld [vmem:[%s4213_s6 + $0x10] sm:$0xff] }
 0xf54   :  { %1771 = vrot.lane.b32.xlu0 %v3965_v27, %s3452_s20 }
 0xfa8   :  { %v1690_v29 = vpop.permute.xlu1 %1689 }
 0xfa9   :  { %v1692_v13 = vmul.f32 %v1690_v29, %v1687_v28  ;;  %v3431_v28 = vld [vmem:[%s4213_s6] sm:$0xff] }
 0xfab   :  { %v3970_v20 = vadd.f32 %v1693_v30, %v1692_v13  ;;  %v3432_v30 = vld [vmem:[%s4215_s8] ss:$0 sm:$0xff] }
 0xfad   :  { %1696 = vrot.lane.b32.xlu1 %v3970_v20, %s3452_s20 }
 0xfc6   :  { %v1772_v49 = vpop.permute.xlu0 %1771 }
 0xfc7   :  { %3210 = vmatmul.mubr.msk.f32.vlgmr.msra.gmra.mxu1 %vm240_vm3, %v1772_v49 }
 0xfc8   :  { %3224 = vmatpush3.msra.mxu1 %v3648_v38  ;;  %3231 = vmatprep.mubr.msk.f32.mxu1 %vm3450_vm2, %v3449_v5  ;;  %v3989_v38 = vld [vmem:[%s4209_s2 + $0x18] sm:$0xff] }
 0xfc9   :  { %3225 = vmatprep.subr.mxu1 %v3449_v5 }
 0xfca   :  { %3226 = vmatpush3.msra.mxu1 %v3656_v39  ;;  %v3998_v39 = vld [vmem:[%s4209_s2 + $0x10] sm:$0xff] }
 0xfcb   :  { %3227 = vmatprep.subr.mxu1 %v3449_v5 }
 0xfcc   :  { %3228 = vmatpush3.msra.mxu1 %v3670_v41  ;;  %v4005_v41 = vld [vmem:[%s4209_s2 + $0x8] sm:$0xff] }
 0xfcd   :  { %3229 = vmatprep.subr.mxu1 %v3449_v5 }
 0xfce   :  { %3230 = vmatpush3.msra.mxu1 %v3679_v42  ;;  %v4012_v42 = vld [vmem:[%s4209_s2] sm:$0xff] }
 0xfcf   :  { %3245 = vmatprep.subr.mxu1 %v3449_v5 }
0x101f   :  { %v1697_v50 = vpop.permute.xlu1 %1696 }
0x1020   :  { %3199 = vmatmul.mubr.msk.f32.vlgmr.msra.gmra.mxu0 %vm240_vm3, %v1697_v50 }
0x1021   :  { %3213 = vmatpush3.msra.mxu0 %v3989_v38  ;;  %3220 = vmatprep.mubr.msk.f32.mxu0 %vm3450_vm2, %v3449_v5 }
0x1022   :  { %3214 = vmatprep.subr.mxu0 %v3449_v5 }
0x1023   :  { %3215 = vmatpush3.msra.mxu0 %v3998_v39 }
0x1024   :  { %3216 = vmatprep.subr.mxu0 %v3449_v5 }
0x1025   :  { %3217 = vmatpush3.msra.mxu0 %v4005_v41 }
0x1026   :  { %3218 = vmatprep.subr.mxu0 %v3449_v5 }
0x1027   :  { %3219 = vmatpush3.msra.mxu0 %v4012_v42 }
0x1028   :  { %3221 = vmatmul.mubr.msk.f32.vlgmr.msra.gmra.mxu0 %vm240_vm3, %v1697_v50  ;;  %3234 = vmatprep.subr.mxu0 %v3449_v5  ;;  %v3433_v50 = vld [vmem:[%s4214_s7] ss:$0 sm:$0xff] }
0x1029   :  { %3235 = vmatpush3.msra.mxu0 %v3623_v33  ;;  %3242 = vmatprep.mubr.msk.f32.mxu0 %vm3450_vm2, %v3449_v5 }
0x102a   :  { %3236 = vmatprep.subr.mxu0 %v3449_v5 }
0x102b   :  { %3237 = vmatpush3.msra.mxu0 %v3631_v35 }
0x102c   :  { %3238 = vmatprep.subr.mxu0 %v3449_v5 }
0x102d   :  { %3239 = vmatpush3.msra.mxu0 %v3643_v37 }
0x102e   :  { %3240 = vmatprep.subr.mxu0 %v3449_v5 }
0x102f   :  { %3241 = vmatpush3.msra.mxu0 %v3662_v40  ;;  %v4033_v40 = vld [vmem:[%s4211_s4] ss:$0 sm:$0xff] }
0x1030   :  { %3256 = vmatprep.subr.mxu0 %v3449_v5 }
0x1087   :  { %v1841_v31 = vpop.f32.mrf.mxu1 }
0x1088   :  { %v1842_v33 = vadd.f32 %v3709_v51, %v1841_v31 }
0x1089   :  { %v3211_v32 = vpop.f32.mrf.mxu1 }
0x108a   :  { %1853 = vrot.lane.b32.xlu0 %v1842_v33, %s3451_s17 }
0x10e0   :  { %v1766_v34 = vpop.f32.mrf.mxu0 }
0x10e1   :  { %v1767_v45 = vadd.f32 %v3738_v56, %v1766_v34 }
0x10e2   :  { %v3200_v35 = vpop.f32.mrf.mxu0 }
0x10e3   :  { %v1845_v46 = vadd.f32 %v1842_v33, %v1767_v45 }
0x10e5   :  { %v2829_v47 = vmul.f32 -1.442695, %v1845_v46 }
0x10e7   :  { %3384 = vpow2.f32 %v2829_v47 }
0x10e8   :  { %v1937_v37 = vpop.f32.mrf.mxu0 }
0x10e9   :  { %v1938_v53 = vadd.f32 %v4033_v40, %v1937_v37  ;;  %v204_v37 = vadd.f32 %v4041_v9, %v3600_v14 }
0x10ea   :  { %v3222_v43 = vpop.f32.mrf.mxu0 }
0x10eb   :  { %1949 = vrot.lane.b32.xlu1 %v1938_v53, %s3451_s17  ;;  %v1941_v54 = vadd.f32 %v1938_v53, %v199_v11 }
0x10ed   :  { %v2831_v44 = vmul.f32 -1.442695, %v1941_v54 }
0x10f4   :  { %v3385_v51 = vpop.eup %3384 }
0x10f5   :  { %v1849_v36 = vadd.f32 1.0, %v3385_v51 }
0x10f7   :  { %3386 = vrcp.f32 %v1849_v36 }
0x10f8   :  { %3388 = vpow2.f32 %v2831_v44 }
0x10fc   :  { %v1854_v56 = vpop.permute.xlu0 %1853 }
0x1104   :  { %v3387_v3 = vpop.eup %3386 }
0x1105   :  { %v1856_v6 = vmul.f32 %v3387_v3, %v1854_v56  ;;  %v3389_v48 = vpop.eup %3388  ;;  %v1863_v0 = vsub.f32 1.0, %v3387_v3  ;;  %v1869_v2 = vmul.f32 %v3387_v3, %v3965_v27  ;;  %v3430_v27 = vld [vmem:[%s4213_s6 + $0x8] sm:$0xff]  ;;  %s2854_s6 = sld [smem:[#allocation2 + $0x7]] }
0x1106   :  { %v1945_v52 = vadd.f32 1.0, %v3389_v48 }
0x1107   :  { %1858 = vrot.lane.b32.xlu0 %v1856_v6, %s3451_s17 }
0x1108   :  { %3390 = vrcp.f32 %v1945_v52 }
0x1115   :  { %v3391_v55 = vpop.eup %3390 }
0x1116   :  { %v1959_v16 = vsub.f32 1.0, %v3391_v55  ;;  %v1965_v10 = vmul.f32 %v3391_v55, %v3970_v20 }
0x115d   :  { %v1950_v57 = vpop.permute.xlu1 %1949 }
0x115e   :  { %v1952_v58 = vmul.f32 %v3391_v55, %v1950_v57 }
0x1160   :  { %1954 = vrot.lane.b32.xlu1 %v1952_v58, %s3451_s17 }
0x1179   :  { %v1859_v59 = vpop.permute.xlu0 %1858 }
0x117a   :  { %v1861_v60 = vadd.f32 %v1859_v59, %v1767_v45 }
0x117c   :  { %3392 = vtanh.f32 %v1861_v60 }
0x1189   :  { %v3393_v61 = vpop.eup %3392 }
0x118a   :  { %1865 = vrot.lane.b32.xlu0 %v3393_v61, %s3452_s20 }
0x11d2   :  { %v1955_v62 = vpop.permute.xlu1 %1954 }
0x11d3   :  { %v1957_v63 = vadd.f32 %v1955_v62, %v199_v11 }
0x11d5   :  { %3394 = vtanh.f32 %v1957_v63 }
0x11e2   :  { %v3395_v15 = vpop.eup %3394 }
0x11e3   :  { %1961 = vrot.lane.b32.xlu1 %v3395_v15, %s3452_s20 }
0x11fc   :  { %v1866_v1 = vpop.permute.xlu0 %1865 }
0x11fd   :  { %v1868_v4 = vmul.f32 %v1866_v1, %v1863_v0 }
0x11ff   :  { %v4049_v7 = vadd.f32 %v1869_v2, %v1868_v4 }
0x1201   :  { %2043 = vrot.lane.b32.xlu0 %v4049_v7, %s3452_s20 }
0x1255   :  { %v1962_v8 = vpop.permute.xlu1 %1961 }
0x1256   :  { %v1964_v17 = vmul.f32 %v1962_v8, %v1959_v16 }
0x1258   :  { %v4054_v18 = vadd.f32 %v1965_v10, %v1964_v17 }
0x125a   :  { %1968 = vrot.lane.b32.xlu1 %v4054_v18, %s3452_s20 }
0x1273   :  { %v2044_v19 = vpop.permute.xlu0 %2043 }
0x1274   :  { %3243 = vmatmul.mubr.msk.f32.vlgmr.msra.gmra.mxu0 %vm240_vm3, %v2044_v19 }
0x1275   :  { %3257 = vmatpush3.msra.mxu0 %v3424_v21  ;;  %3264 = vmatprep.mubr.msk.f32.mxu0 %vm3450_vm2, %v3449_v5 }
0x1276   :  { %3258 = vmatprep.subr.mxu0 %v3449_v5 }
0x1277   :  { %3259 = vmatpush3.msra.mxu0 %v3425_v23 }
0x1278   :  { %3260 = vmatprep.subr.mxu0 %v3449_v5 }
0x1279   :  { %3261 = vmatpush3.msra.mxu0 %v3426_v12 }
0x127a   :  { %3262 = vmatprep.subr.mxu0 %v3449_v5 }
0x127b   :  { %3263 = vmatpush3.msra.mxu0 %v3427_v22 }
0x127c   :  { %3278 = vmatprep.subr.mxu0 %v3449_v5 }
0x12cc   :  { %v1969_v24 = vpop.permute.xlu1 %1968 }
0x12cd   :  { %3232 = vmatmul.mubr.msk.f32.vlgmr.msra.gmra.mxu1 %vm240_vm3, %v1969_v24 }
0x12ce   :  { %3246 = vmatpush3.msra.mxu1 %v3989_v38  ;;  %3253 = vmatprep.mubr.msk.f32.mxu1 %vm3450_vm2, %v3449_v5 }
0x12cf   :  { %3247 = vmatprep.subr.mxu1 %v3449_v5 }
0x12d0   :  { %3248 = vmatpush3.msra.mxu1 %v3998_v39 }
0x12d1   :  { %3249 = vmatprep.subr.mxu1 %v3449_v5 }
0x12d2   :  { %3250 = vmatpush3.msra.mxu1 %v4005_v41 }
0x12d3   :  { %3251 = vmatprep.subr.mxu1 %v3449_v5 }
0x12d4   :  { %3252 = vmatpush3.msra.mxu1 %v4012_v42 }
0x12d5   :  { %3254 = vmatmul.mubr.msk.f32.vlgmr.msra.gmra.mxu1 %vm240_vm3, %v1969_v24  ;;  %3267 = vmatprep.subr.mxu1 %v3449_v5 }
0x12d6   :  { %3268 = vmatpush3.msra.mxu1 %v3428_v25  ;;  %3275 = vmatprep.mubr.msk.f32.mxu1 %vm3450_vm2, %v3449_v5  ;;  %v2418_v25 = vld [vmem:[%s4217_s10 + $0x18] sm:$0xff] }
0x12d7   :  { %3269 = vmatprep.subr.mxu1 %v3449_v5 }
0x12d8   :  { %3270 = vmatpush3.msra.mxu1 %v3429_v26  ;;  %v2417_v26 = vld [vmem:[%s4217_s10 + $0x10] sm:$0xff] }
0x12d9   :  { %3271 = vmatprep.subr.mxu1 %v3449_v5 }
0x12da   :  { %3272 = vmatpush3.msra.mxu1 %v3430_v27  ;;  %v2416_v27 = vld [vmem:[%s4217_s10 + $0x8] sm:$0xff] }
0x12db   :  { %3273 = vmatprep.subr.mxu1 %v3449_v5 }
0x12dc   :  { %3274 = vmatpush3.msra.mxu1 %v3431_v28  ;;  %v2415_v28 = vld [vmem:[%s4217_s10] sm:$0xff]  ;;  %s3454_s10 = smov 127  }
0x12dd   :  { %3289 = vmatprep.subr.mxu1 %v3449_v5 }
0x1334   :  { %v2113_v29 = vpop.f32.mrf.mxu0 }
0x1335   :  { %v2114_v13 = vadd.f32 %v3432_v30, %v2113_v29 }
0x1336   :  { %v3244_v20 = vpop.f32.mrf.mxu0 }
0x1337   :  { %2125 = vrot.lane.b32.xlu0 %v2114_v13, %s3451_s17 }
0x138d   :  { %v2038_v49 = vpop.f32.mrf.mxu1 }
0x138e   :  { %v2039_v38 = vadd.f32 %v3433_v50, %v2038_v49 }
0x138f   :  { %v3233_v39 = vpop.f32.mrf.mxu1 }
0x1390   :  { %v2117_v41 = vadd.f32 %v2114_v13, %v2039_v38 }
0x1392   :  { %v2834_v42 = vmul.f32 -1.442695, %v2117_v41 }
0x1394   :  { %3396 = vpow2.f32 %v2834_v42 }
0x1395   :  { %v2209_v31 = vpop.f32.mrf.mxu1 }
0x1396   :  { %v2210_v33 = vadd.f32 %v4033_v40, %v2209_v31 }
0x1397   :  { %v3255_v32 = vpop.f32.mrf.mxu1 }
0x1398   :  { %2221 = vrot.lane.b32.xlu1 %v2210_v33, %s3451_s17  ;;  %v2213_v53 = vadd.f32 %v2210_v33, %v204_v37  ;;  %v2494_v33 = vld [vmem:[%s4216_s9] sm:$0xff]  ;;  %v2496_v32 = vstv %s2495_s18 }
0x139a   :  { %v2836_v43 = vmul.f32 -1.442695, %v2213_v53 }
0x13a1   :  { %v3397_v34 = vpop.eup %3396 }
0x13a2   :  { %v2121_v45 = vadd.f32 1.0, %v3397_v34  ;;  %v2841_v34 = vld [vmem:[%s4216_s9 + $0x8] sm:$0xff] }
0x13a4   :  { %3398 = vrcp.f32 %v2121_v45 }
0x13a5   :  { %3400 = vpow2.f32 %v2836_v43 }
0x13a9   :  { %v2126_v46 = vpop.permute.xlu0 %2125 }
0x13b1   :  { %v3399_v35 = vpop.eup %3398 }
0x13b2   :  { %v2128_v47 = vmul.f32 %v3399_v35, %v2126_v46  ;;  %v3401_v51 = vpop.eup %3400  ;;  %v2135_v9 = vsub.f32 1.0, %v3399_v35  ;;  %v2141_v55 = vmul.f32 %v3399_v35, %v4049_v7  ;;  %v2497_v35 = vmul.f32 %v2496_v32, %v2494_v33 }
0x13b3   :  { %v2217_v36 = vadd.f32 1.0, %v3401_v51  ;;  %v2845_v51 = vld [vmem:[%s4216_s9 + $0x18] sm:$0xff] }
0x13b4   :  { %2130 = vrot.lane.b32.xlu0 %v2128_v47, %s3451_s17  ;;  %v2843_v47 = vld [vmem:[%s4216_s9 + $0x10] sm:$0xff] }
0x13b5   :  { %3402 = vrcp.f32 %v2217_v36  ;;  %v2517_v36 = vstv %s2846_s5 }
0x13c2   :  { %v3403_v40 = vpop.eup %3402 }
0x13c3   :  { %v2231_v59 = vsub.f32 1.0, %v3403_v40  ;;  %v2237_v61 = vmul.f32 %v3403_v40, %v4054_v18 }
0x140a   :  { %v2222_v3 = vpop.permute.xlu1 %2221 }
0x140b   :  { %v2224_v56 = vmul.f32 %v3403_v40, %v2222_v3  ;;  %v2506_v40 = vadd.f32 %v2841_v34, %v2494_v33 }
0x140d   :  { %2226 = vrot.lane.b32.xlu1 %v2224_v56, %s3451_s17  ;;  %v2518_v56 = vmul.f32 %v2845_v51, %v2517_v36 }
0x1426   :  { %v2131_v6 = vpop.permute.xlu0 %2130 }
0x1427   :  { %v2133_v11 = vadd.f32 %v2131_v6, %v2039_v38  ;;  %v2847_v6 = vld [vmem:[%s4216_s9 + $0x20] sm:$0xff] }
0x1429   :  { %3404 = vtanh.f32 %v2133_v11  ;;  %v2524_v11 = vstv %s2848_s26 }
0x1436   :  { %v3405_v54 = vpop.eup %3404 }
0x1437   :  { %2137 = vrot.lane.b32.xlu0 %v3405_v54, %s3452_s20  ;;  %v2513_v54 = vadd.f32 %v2843_v47, %v2506_v40 }
0x147f   :  { %v2227_v44 = vpop.permute.xlu1 %2226 }
0x1480   :  { %v2229_v48 = vadd.f32 %v2227_v44, %v204_v37  ;;  %v2510_v37 = vstv %s2844_s19 }
0x1481   :  { %v2511_v43 = vmul.f32 %v2843_v47, %v2510_v37 }
0x1482   :  { %3406 = vtanh.f32 %v2229_v48  ;;  %v2525_v48 = vmul.f32 %v2847_v6, %v2524_v11 }
0x148f   :  { %v3407_v14 = vpop.eup %3406 }
0x1490   :  { %2233 = vrot.lane.b32.xlu1 %v3407_v14, %s3452_s20  ;;  %v2849_v14 = vld [vmem:[%s4216_s9 + $0x28] sm:$0xff] }
0x14a9   :  { %v2138_v52 = vpop.permute.xlu0 %2137 }
0x14aa   :  { %v2140_v57 = vmul.f32 %v2138_v52, %v2135_v9  ;;  %v2531_v9 = vstv %s2850_s29  ;;  %v2520_v52 = vadd.f32 %v2845_v51, %v2513_v54 }
0x14ac   :  { %v2142_v58 = vadd.f32 %v2141_v55, %v2140_v57  ;;  %v2532_v57 = vmul.f32 %v2849_v14, %v2531_v9 }
0x14ae   :  { %2315 = vrot.lane.b32.xlu0 %v2142_v58, %s3452_s20 }
0x1502   :  { %v2234_v60 = vpop.permute.xlu1 %2233 }
0x1503   :  { %v2236_v62 = vmul.f32 %v2234_v60, %v2231_v59  ;;  %v2851_v59 = vld [vmem:[%s4216_s9 + $0x30] sm:$0xff]  ;;  %v2538_v60 = vstv %s2852_s14 }
0x1505   :  { %v2238_v63 = vadd.f32 %v2237_v61, %v2236_v62  ;;  %v2527_v61 = vadd.f32 %v2847_v6, %v2520_v52 }
0x1507   :  { %2240 = vrot.lane.b32.xlu1 %v2238_v63, %s3452_s20  ;;  %v2539_v63 = vmul.f32 %v2851_v59, %v2538_v60 }
0x1520   :  { %v2316_v15 = vpop.permute.xlu0 %2315 }
0x1521   :  { %3276 = vmatmul.mubr.msk.f32.vlgmr.msra.gmra.mxu1 %vm240_vm3, %v2316_v15 }
0x1522   :  { %3291 = vmatprep.mubr.msk.f32.mxu1 %vm3450_vm2, %v3449_v5 }
0x1579   :  { %v2241_v0 = vpop.permute.xlu1 %2240 }
0x157a   :  { %3265 = vmatmul.mubr.msk.f32.vlgmr.msra.gmra.mxu0 %vm240_vm3, %v2241_v0  ;;  %v2853_v0 = vld [vmem:[%s4216_s9 + $0x38] sm:$0xff] }
0x157b   :  { %3286 = vmatprep.mubr.msk.f32.mxu0 %vm3450_vm2, %v3449_v5  ;;  %3279 = vmatpush3.msra.mxu0 %v2418_v25 }
0x157c   :  { %3280 = vmatprep.subr.mxu0 %v3449_v5 }
0x157d   :  { %3281 = vmatpush3.msra.mxu0 %v2417_v26 }
0x157e   :  { %3282 = vmatprep.subr.mxu0 %v3449_v5 }
0x157f   :  { %3283 = vmatpush3.msra.mxu0 %v2416_v27 }
0x1580   :  { %3284 = vmatprep.subr.mxu0 %v3449_v5 }
0x1581   :  { %3285 = vmatpush3.msra.mxu0 %v2415_v28 }
0x1582   :  { %3294 = vmatprep.subr.mxu0 %v3449_v5 }
0x15e1   :  { %v2385_v1 = vpop.f32.mrf.mxu1 }
0x15e2   :  { %v2386_v2 = vadd.f32 %v3432_v30, %v2385_v1  ;;  %v3453_v30 = vmov 0   ;;  %v2545_v1 = vstv %s2854_s6 }
0x15e3   :  { %v3277_v4 = vpop.f32.mrf.mxu1  ;;  %3316 = vset.pattern.permute.xlu1 %v3453_v30 }
0x15e4   :  { %2397 = vrot.lane.b32.xlu0 %v2386_v2, %s3451_s17 }
0x163a   :  { %v2310_v7 = vpop.f32.mrf.mxu0 }
0x163b   :  { %v2311_v16 = vadd.f32 %v3433_v50, %v2310_v7  ;;  %v2546_v7 = vmul.f32 %v2853_v0, %v2545_v1 }
0x163c   :  { %v3266_v8 = vpop.f32.mrf.mxu0 }
0x163d   :  { %v2389_v10 = vadd.f32 %v2386_v2, %v2311_v16  ;;  %v2534_v2 = vadd.f32 %v2849_v14, %v2527_v61 }
0x163f   :  { %v2839_v17 = vmul.f32 -1.442695, %v2389_v10  ;;  %v2541_v8 = vadd.f32 %v2851_v59, %v2534_v2 }
0x1641   :  { %3408 = vpow2.f32 %v2839_v17 }
0x164e   :  { %v3409_v18 = vpop.eup %3408 }
0x164f   :  { %v2393_v19 = vadd.f32 1.0, %v3409_v18 }
0x1651   :  { %3410 = vrcp.f32 %v2393_v19 }
0x1656   :  { %v2398_v23 = vpop.permute.xlu0 %2397 }
0x165e   :  { %v3411_v21 = vpop.eup %3410 }
0x165f   :  { %v2400_v12 = vmul.f32 %v3411_v21, %v2398_v23  ;;  %v2407_v13 = vsub.f32 1.0, %v3411_v21  ;;  %v2413_v49 = vmul.f32 %v3411_v21, %v2142_v58  ;;  %v2589_v58 = vlaneseq }
0x1660   :  { %v2548_v21 = vadd.f32 %v2853_v0, %v2541_v8 }
0x1661   :  { %2402 = vrot.lane.b32.xlu1 %v2400_v12, %s3451_s17  ;;  %v2590_v15 = vshrl.u32 %v2589_v58, 7  ;;  %v2596_v12 = vstv %s2855_s3 }
0x1662   :  { %vm2601_vm4 = vcmp.ne.f32.partialorder %v2548_v21, 0.0 }
0x1663   :  { %v2602_v26 = vsel %vm2601_vm4, 1.0, %v3449_v5 }
0x16d3   :  { %v2403_v22 = vpop.permute.xlu1 %2402 }
0x16d4   :  { %v2405_v24 = vadd.f32 %v2403_v22, %v2311_v16  ;;  %v2591_v16 = vsub.s32 0, %v2590_v15 }
0x16d6   :  { %3412 = vtanh.f32 %v2405_v24 }
0x16e3   :  { %v3413_v29 = vpop.eup %3412 }
0x16e4   :  { %2409 = vrot.lane.b32.xlu0 %v3413_v29, %s3452_s20 }
0x1756   :  { %v2410_v20 = vpop.permute.xlu0 %2409 }
0x1757   :  { %v2412_v50 = vmul.f32 %v2410_v20, %v2407_v13 }
0x1759   :  { %v2414_v38 = vadd.f32 %v2413_v49, %v2412_v50 }
0x175b   :  { %2420 = vrot.lane.b32.xlu1 %v2414_v38, %s3452_s20  ;;  %s2842_s20 = sld [smem:[#allocation2 + $0x1]] }
0x1761   :  { %v2503_v45 = vstv %s2842_s20 }
0x1762   :  { %v2504_v46 = vmul.f32 %v2841_v34, %v2503_v45 }
0x1764   :  { %v2505_v53 = vadd.f32 %v2504_v46, %v2497_v35  ;;  %v2693_v35 = vld [vmem:[%s4218_s11] sm:$0xff] }
0x1766   :  { %v2512_v3 = vadd.f32 %v2511_v43, %v2505_v53  ;;  %v2776_v53 = vstv %s2858_s22 }
0x1768   :  { %v2519_v44 = vadd.f32 %v2518_v56, %v2512_v3 }
0x176a   :  { %v2526_v55 = vadd.f32 %v2525_v48, %v2519_v44 }
0x176c   :  { %v2533_v62 = vadd.f32 %v2532_v57, %v2526_v55 }
0x176e   :  { %v2540_v4 = vadd.f32 %v2539_v63, %v2533_v62 }
0x1770   :  { %v2547_v17 = vadd.f32 %v2546_v7, %v2540_v4 }
0x17cd   :  { %v2421_v39 = vpop.permute.xlu1 %2420 }
0x17ce   :  { %3287 = vmatmul.mubr.msk.f32.vlgmr.msra.gmra.mxu0 %vm240_vm3, %v2421_v39  ;;  %3290 = vmatpush3.msra.mxu1 %v2421_v39  ;;  %v2696_v39 = vld [vmem:[%s4218_s11 + $0x18] sm:$0xff] }
0x17cf   :  { %3302 = vmatprep.mubr.msk.f32.mxu0 %vm3450_vm2, %v3449_v5  ;;  %3295 = vmatpush3.msra.mxu0 %v2696_v39 }
0x17d0   :  { %3296 = vmatprep.subr.mxu0 %v3449_v5 }
0x188e   :  { %v4155_v41 = vpop.f32.mrf.mxu0 }
0x188f   :  { %2586 = vperm.xlu1 %3316, %v4155_v41   ;;  %2550 = vrot.lane.b32.xlu0 %v4155_v41, %s3454_s10 }
0x1890   :  { %v3288_v42 = vpop.f32.mrf.mxu0 }
0x1891   :  { %v2695_v42 = vld [vmem:[%s4218_s11 + $0x10] sm:$0xff] }
0x1892   :  { %3297 = vmatpush3.msra.mxu0 %v2695_v42 }
0x1893   :  { %3298 = vmatprep.subr.mxu0 %v3449_v5 }
0x1901   :  { %v2551_v31 = vpop.permute.xlu0 %2550 }
0x1902   :  { %2553 = vxpose.xlu0.b32.start.end [1/1] (short) (narrow) %v2551_v31, 8  ;;  %v2694_v31 = vld [vmem:[%s4218_s11 + $0x8] sm:$0xff] }
0x1903   :  { %3299 = vmatpush3.msra.mxu0 %v2694_v31 }
0x1904   :  { %3300 = vmatprep.subr.mxu0 %v3449_v5 }
0x1905   :  { %3301 = vmatpush3.msra.mxu0 %v2693_v35 }
0x190a   :  { %v2587_v19 = vpop.permute.xlu1 %2586 }
0x192b   :  { %3317 = vset.pattern.permute.xlu0 %v3453_v30 }
0x197e   :  { %v2569_v10 = vpop.trf.xlu0 }
0x197f   :  { %v2592_v18 = vrot.slane %v2569_v10, %v2591_v16 }
0x1981   :  { %v2593_v23 = vadd.f32 %v2592_v18, %v2587_v19 }
0x1983   :  { %v2594_v22 = vadd.f32 %v2593_v23, %v2547_v17 }
0x1985   :  { %v2597_v24 = vadd.f32 %v2596_v12, %v2594_v22 }
0x1987   :  { %vm2598_vm5 = vcmp.ge.f32.partialorder %v2597_v24, 0.0  ;;  %v2599_v25 = vmul.f32 0.01, %v2597_v24 }
0x1989   :  { %v2600_v27 = vsel %vm2598_vm5, %v2597_v24, %v2599_v25 }
0x198a   :  { %v2603_v28 = vmul.f32 %v2602_v26, %v2600_v27 }
0x198c   :  { %vm2604_vm7 = vcmp.eq.f32.partialorder %v2603_v28, 0.0 }
0x198d   :  { %v2605_v29 = vsel %vm2604_vm7, -10000.0, %v2603_v28 }
0x198e   :  { %v2607_v30 = vsel %vm2606_vm6, %v2605_v29, -inf }
0x198f   :  { %2608 = vmax.xlane.f32.xlu1 %v2607_v30 }
0x1a18   :  { %v2609_v13 = vpop.xlane.xlu1 %2608 }
0x1a19   :  { %v2610_v20 = vsub.f32 %v2605_v29, %v2609_v13 }
0x1a1b   :  { %v2611_v49 = vmul.f32 1.442695, %v2610_v20 }
0x1a1d   :  { %3414 = vpow2.f32 %v2611_v49 }
0x1a2a   :  { %v3415_v50 = vpop.eup %3414 }
0x1a2b   :  { %v2613_v38 = vsel %vm2606_vm6, %v3415_v50, 0.0 }
0x1a2c   :  { %2614 = vadd.xlane.f32.xlu0 %v2613_v38 }
0x1ab5   :  { %v2615_v33 = vpop.xlane.xlu0 %2614 }
0x1ab6   :  { %3416 = vrcp.f32 %v2615_v33 }
0x1ac3   :  { %v3417_v32 = vpop.eup %3416 }
0x1ac4   :  { %v2617_v34 = vmul.f32 %v3417_v32, %v3415_v50 }
0x1ac6   :  { %v2618_v45 = vmul.f32 %v2617_v34, %v2602_v26 }
0x1ac8   :  { %3292 = vmatmul.mubr.msk.f32.vlgmr.msra.gmra.mxu1 %vm2606_vm6, %v2618_v45 }
0x1b88   :  { %v2689_v46 = vpop.f32.mrf.mxu1 }
0x1b89   :  { %3303 = vmatmul.mubr.msk.f32.vlgmr.msra.gmra.mxu0 %vm240_vm3, %v2689_v46 }
0x1b8a   :  { %v3293_v47 = vpop.f32.mrf.mxu1 }
0x1c49   :  { %v2766_v37 = vpop.f32.mrf.mxu0 }
0x1c4a   :  { %2771 = vrot.lane.b32.xlu1 %v2766_v37, %s3455_s21 }
0x1c4b   :  { %v3304_v5 = vpop.f32.mrf.mxu0 }
0x1cbc   :  { %v2772_v43 = vpop.permute.xlu1 %2771 }
0x1cbd   :  { %v2774_v51 = vadd.f32 %v2772_v43, %v4155_v41 }
0x1cbf   :  { %v2777_v36 = vadd.f32 %v2776_v53, %v2774_v51 }
0x1cc1   :  { %2779 = vrot.lane.b32.xlu1 %v2777_v36, %s3456_s23 }
0x1d33   :  { %v2780_v40 = vpop.permute.xlu1 %2779 }
0x1d34   :  { %2783 = vst.msk [vmem:[%s4220_s13] sm:$0xff] %vm2782_vm8, %v2780_v40 }
0x1d35   :  { %2788 = vsyncpa [#allocation3], 1 }

</bundles_post_ra>
